<compile_context>
chip_gen: v6e
topology: v6e:2x2x1
jax: 0.10.0
libtpu: 0.0.40
codegen_flags: <defaults>
</compile_context>

<pallas_src>
import jax
import jax.numpy as jnp
from jax import lax
from jax.experimental import pallas as pl
from jax.experimental.pallas import tpu as pltpu  # noqa: F401  (TPU backend)

# ---- true model dims --------------------------------------------------------
STATE_DIM = 64      # VisualParser.state_dim
ARGS_DIM = 64       # VisualParser.args_dim
OP_DIM = 232        # VisualParser.op_dim
N_OPS = 10          # number of DSL ops (DSL undefined in source)
VOCAB = 3000

# ---- padded (lane-dense) dims ----------------------------------------------
SA = STATE_DIM + ARGS_DIM   # 128  (= rfc1 fan-in, exact)
H1 = 256                    # rfc1 out 200 -> 256
H2 = 512                    # rfc2 out 399 -> 512
SP = 128                    # parse_state 64 -> 128 (upper lanes stay 0)
P1 = 384                    # pfc1 out 300 -> 384
P2 = 256                    # pfc2 out 200 -> 256
P3 = 128                    # pfc3 out 1 -> 128 (col 0 real)
NOPP = 16                   # ops rows 10 -> 16 (masked)
SF_H = 128                  # stochField hidden
SF_O = 128                  # stochField out 2 -> 128 (cols 0,1 real)

# lanes of the packed misc output (single (1, 128) row)
LANE_LOGP = 64
LANE_MU = 65
LANE_IDX = 66
PDF_BASE = 80               # pdf[0..NOPP-1] lives in lanes 80..95


# ---- elementwise helpers (VPU/EUP only) -------------------------------------
def _softplus(x):
    return jnp.maximum(x, 0.0) + jnp.log1p(jnp.exp(-jnp.abs(x)))


def _sigmoid(x):
    return 1.0 / (1.0 + jnp.exp(-x))


def _bf16(x):
    return x.astype(jnp.bfloat16)


def _full_spec(shape):
    # whole-array block resident in VMEM (total working set ~1.0 MB)
    return pl.BlockSpec(shape, lambda: (0,) * len(shape))


# -----------------------------------------------------------------------------
# Fused kernel: repeat_vector -> pdf_ops (+argmax/log_p) -> tsi + stochField
# -----------------------------------------------------------------------------
def fused_parse_kernel(sa_ref, op_proj_ref,
                       rv_w1_ref, rv_b1_ref, rv_w2_ref, rv_b2_ref,
                       rv_w3_ref, rv_b3_ref,
                       pd_w1s_ref, pd_w2_ref, pd_b2_ref, pd_w3_ref, pd_b3_ref,
                       tsi_w_ref, tsi_b_ref,
                       sf_w1_ref, sf_b1_ref, sf_w2_ref, sf_b2_ref,
                       sf_w3_ref, sf_b3_ref,
                       misc_ref):
    f32 = jnp.float32
    sa = _bf16(sa_ref[...])                                   # [1, SA]

    def dot(a, w_ref):
        return jnp.dot(a, w_ref[...], preferred_element_type=f32)

    # ---- repeat_vector: tanh(rfc1) -> softplus(rfc2) -> tanh(rfc3) ----------
    h = jnp.tanh(dot(sa, rv_w1_ref) + rv_b1_ref[...])         # [1, H1]
    h = _softplus(dot(_bf16(h), rv_w2_ref) + rv_b2_ref[...])  # [1, H2]
    parse_state = jnp.tanh(dot(_bf16(h), rv_w3_ref) + rv_b3_ref[...])  # [1, SP]
    # lanes >= 64 of parse_state are exactly 0 (zero-padded W/b, tanh(0)=0)

    # ---- pdf_ops: tanh(pfc1) -> softplus(pfc2) -> softplus(pfc3) -> norm ----
    # op_proj = ops @ W1_op + b1 was folded at parameter-build time.
    state_term = dot(_bf16(parse_state), pd_w1s_ref)          # [1, P1] (shared)
    h = jnp.tanh(op_proj_ref[...] + state_term)               # [NOPP, P1]
    h = _softplus(dot(_bf16(h), pd_w2_ref) + pd_b2_ref[...])  # [NOPP, P2]
    t = _softplus(dot(_bf16(h), pd_w3_ref) + pd_b3_ref[...])  # [NOPP, P3]

    row_id = lax.broadcasted_iota(jnp.int32, (NOPP, 1), 0)
    valid = row_id < N_OPS
    t0 = jnp.where(valid, t[:, 0:1], 0.0)                     # mask padded ops rows
    denom = jnp.sum(t0, axis=0, keepdims=True)                # [1, 1]
    pdf_col = t0 / denom                                      # [NOPP, 1]

    max_pdf = jnp.max(pdf_col, axis=0, keepdims=True)         # [1, 1]
    log_p = -jnp.log(max_pdf)                                 # -log(pdf[argmax])
    row_f = row_id.astype(f32)
    idx = jnp.min(jnp.where(pdf_col == max_pdf, row_f, float(NOPP)),
                  axis=0, keepdims=True)                      # first argmax, [1,1]

    # sublane->lane scatter of pdf onto lanes PDF_BASE..PDF_BASE+NOPP-1
    lane2 = lax.broadcasted_iota(jnp.int32, (NOPP, SP), 1)
    sel = (lane2 == (row_id + PDF_BASE)).astype(f32)          # [NOPP, SP]
    pdf_row = jnp.sum(pdf_col * sel, axis=0, keepdims=True)   # [1, SP]

    # ---- tsi(arg) + parse_state -> stochField.parameterize ------------------
    x = dot(sa, tsi_w_ref) + tsi_b_ref[...] + parse_state     # [1, SP]
    h = _sigmoid(dot(_bf16(x), sf_w1_ref) + sf_b1_ref[...])   # sigmoid(fc1(x))
    h = jnp.tanh(dot(_bf16(h), sf_w2_ref) + sf_b2_ref[...])   # tanh(fc2(.))
    ms = _softplus(dot(_bf16(h), sf_w3_ref) + sf_b3_ref[...])  # [1, SF_O]
    mu = ms[:, 0:1]                                           # (mu, sigma)[0]

    # ---- pack everything into one lane-dense (1, 128) row -------------------
    lane = lax.broadcasted_iota(jnp.int32, (1, SP), 1)
    misc = parse_state + pdf_row        # lanes 0..63 = parse_state, 80..95 = pdf
    misc = jnp.where(lane == LANE_LOGP, log_p, misc)
    misc = jnp.where(lane == LANE_MU, mu, misc)
    misc = jnp.where(lane == LANE_IDX, idx, misc)
    misc_ref[...] = misc


def fused_parse_step(kparams, semantics, arg):
    sa = jnp.concatenate([semantics, arg], axis=-1)           # [1, 128]
    args = (sa,) + tuple(kparams)
    misc = pl.pallas_call(
        fused_parse_kernel,
        out_shape=jax.ShapeDtypeStruct((1, SP), jnp.float32),
        in_specs=[_full_spec(a.shape) for a in args],
        out_specs=_full_spec((1, SP)),
    )(*args)
    parse_state = misc[:, :STATE_DIM]
    log_p = misc[0, LANE_LOGP]
    mu = misc[0, LANE_MU]
    index = misc[0, LANE_IDX].astype(jnp.int32)
    pdf = misc[0, PDF_BASE:PDF_BASE + N_OPS].reshape(N_OPS, 1)
    return parse_state, pdf, index, log_p, mu


# -----------------------------------------------------------------------------
# parameter construction: nn.Linear-style init, zero-pad + bf16 weights,
# constant-fold the op-side of pfc1 (ops and its weight are both constants).
# -----------------------------------------------------------------------------
def _init_linear(key, fan_in, fan_out):
    kw, kb = jax.random.split(key)
    bound = 1.0 / float(fan_in) ** 0.5
    w = jax.random.uniform(kw, (fan_in, fan_out), jnp.float32, -bound, bound)
    b = jax.random.uniform(kb, (1, fan_out), jnp.float32, -bound, bound)
    return w, b


def _pad_w(w, rows, cols, dtype=jnp.bfloat16):
    out = jnp.zeros((rows, cols), jnp.float32)
    out = out.at[:w.shape[0], :w.shape[1]].set(w)
    return out.astype(dtype)


def _pad_b(b, cols):
    out = jnp.zeros((1, cols), jnp.float32)
    return out.at[:, :b.shape[1]].set(b)


def build_params(key):
    keys = jax.random.split(key, 12)
    # repeat_vector: rfc1(128->200), rfc2(200->399), rfc3(399->64)
    rw1, rb1 = _init_linear(keys[0], STATE_DIM + ARGS_DIM, 200)
    rw2, rb2 = _init_linear(keys[1], 200, 399)
    rw3, rb3 = _init_linear(keys[2], 399, STATE_DIM)
    # pdf_ops: pfc1(296->300), pfc2(300->200), pfc3(200->1)   (pfca is unused)
    pw1, pb1 = _init_linear(keys[3], OP_DIM + STATE_DIM, 300)
    pw2, pb2 = _init_linear(keys[4], 300, 200)
    pw3, pb3 = _init_linear(keys[5], 200, 1)
    # tsi(64->64) + stochField: fc1(64->128), fc2(128->128), fc3(128->2)
    tw, tb = _init_linear(keys[6], ARGS_DIM, STATE_DIM)
    sw1, sb1 = _init_linear(keys[7], STATE_DIM, 128)
    sw2, sb2 = _init_linear(keys[8], 128, 128)
    sw3, sb3 = _init_linear(keys[9], 128, 2)
    # embedding tables (op_vecs / arg_vecs)
    op_vecs = jax.random.normal(keys[10], (VOCAB, OP_DIM), jnp.float32)
    arg_vecs = jax.random.normal(keys[11], (VOCAB, ARGS_DIM), jnp.float32)

    # constant fold:  op_proj = ops @ W1_op + b1   (both operands are constants)
    ops = op_vecs[:N_OPS]                         # op_vecs(torch.tensor(DSL.ops))
    op_proj_real = jnp.dot(ops, pw1[:OP_DIM],
                           preferred_element_type=jnp.float32) + pb1  # [10, 300]
    op_proj = _pad_w(op_proj_real, NOPP, P1, dtype=jnp.float32)       # [16, 384]

    rv_w1 = _pad_w(rw1, SA, H1);   rv_b1 = _pad_b(rb1, H1)
    rv_w2 = _pad_w(rw2, H1, H2);   rv_b2 = _pad_b(rb2, H2)
    rv_w3 = _pad_w(rw3, H2, SP);   rv_b3 = _pad_b(rb3, SP)

    pd_w1s = _pad_w(pw1[OP_DIM:], SP, P1)         # state part of pfc1
    pd_w2 = _pad_w(pw2, P1, P2);   pd_b2 = _pad_b(pb2, P2)
    pd_w3 = _pad_w(pw3, P2, P3);   pd_b3 = _pad_b(pb3, P3)

    # tsi folded onto the [semantics | arg] row: semantics rows are zero
    tsi_full = jnp.zeros((SA, SP), jnp.float32).at[STATE_DIM:, :STATE_DIM].set(tw)
    tsi_w = tsi_full.astype(jnp.bfloat16)
    tsi_b = _pad_b(tb, SP)

    sf_w1 = _pad_w(sw1, SP, SF_H);   sf_b1 = _pad_b(sb1, SF_H)
    sf_w2 = _pad_w(sw2, SF_H, SF_H); sf_b2 = _pad_b(sb2, SF_H)
    sf_w3 = _pad_w(sw3, SF_H, SF_O); sf_b3 = _pad_b(sb3, SF_O)

    kparams = (op_proj, rv_w1, rv_b1, rv_w2, rv_b2, rv_w3, rv_b3,
               pd_w1s, pd_w2, pd_b2, pd_w3, pd_b3,
               tsi_w, tsi_b, sf_w1, sf_b1, sf_w2, sf_b2, sf_w3, sf_b3)
    return kparams, arg_vecs


# -----------------------------------------------------------------------------
# pure-JAX reference of the same (padded, bf16-weight, const-folded) math
# -----------------------------------------------------------------------------
def reference_step(kparams, semantics, arg):
    (op_proj, rv_w1, rv_b1, rv_w2, rv_b2, rv_w3, rv_b3,
     pd_w1s, pd_w2, pd_b2, pd_w3, pd_b3,
     tsi_w, tsi_b, sf_w1, sf_b1, sf_w2, sf_b2, sf_w3, sf_b3) = kparams
    f32 = jnp.float32

    def dot(a, w):
        return jnp.dot(a, w, preferred_element_type=f32)

    sa = _bf16(jnp.concatenate([semantics, arg], axis=-1))
    h = jnp.tanh(dot(sa, rv_w1) + rv_b1)
    h = _softplus(dot(_bf16(h), rv_w2) + rv_b2)
    ps = jnp.tanh(dot(_bf16(h), rv_w3) + rv_b3)

    st = dot(_bf16(ps), pd_w1s)
    h = jnp.tanh(op_proj + st)
    h = _softplus(dot(_bf16(h), pd_w2) + pd_b2)
    t = _softplus(dot(_bf16(h), pd_w3) + pd_b3)
    t0 = jnp.where(jnp.arange(NOPP)[:, None] < N_OPS, t[:, 0:1], 0.0)
    pdf = t0 / jnp.sum(t0)
    idx = jnp.argmax(pdf[:, 0])
    log_p = -jnp.log(pdf[idx, 0])

    x = dot(sa, tsi_w) + tsi_b + ps
    h = _sigmoid(dot(_bf16(x), sf_w1) + sf_b1)
    h = jnp.tanh(dot(_bf16(h), sf_w2) + sf_b2)
    ms = _softplus(dot(_bf16(h), sf_w3) + sf_b3)
    mu = ms[0, 0]
    return ps[:, :STATE_DIM], pdf[:N_OPS], idx, log_p, mu


if __name__ == "__main__":
    import numpy as np

    key = jax.random.PRNGKey(0)
    k_param, k_sem = jax.random.split(key)
    kparams, arg_vecs = build_params(k_param)

    # TODO(synk): EncoderNet is undefined in the source; this [1, 64] vector
    # stands in for its semantics output.
    semantics = jax.random.normal(k_sem, (1, STATE_DIM), jnp.float32)
    root_arg = arg_vecs[0:1]                       # arg_vecs(torch.tensor([0]))

    step = jax.jit(fused_parse_step)
    outs = step(kparams, semantics, root_arg)
    parse_state, pdf, index, log_p, mu = jax.block_until_ready(outs)

    ref_ps, ref_pdf, ref_idx, ref_logp, ref_mu = reference_step(
        kparams, semantics, root_arg)

    # sanity: shapes, normalized pdf, finite scalars
    assert parse_state.shape == (1, STATE_DIM)
    assert pdf.shape == (N_OPS, 1)
    assert abs(float(jnp.sum(pdf)) - 1.0) < 1e-4
    assert bool(jnp.isfinite(log_p)) and bool(jnp.isfinite(mu))
    # numerical match against the pure-JAX reference (same bf16 weights)
    assert int(index) == int(ref_idx)
    assert np.allclose(np.asarray(parse_state), np.asarray(ref_ps),
                       rtol=5e-3, atol=5e-3)
    assert np.allclose(np.asarray(pdf), np.asarray(ref_pdf),
                       rtol=5e-3, atol=5e-3)
    assert abs(float(log_p) - float(ref_logp)) < 5e-3
    assert abs(float(mu) - float(ref_mu)) < 5e-3

    print("KERNEL_OK")
</pallas_src>

<mosaic_0001>
module attributes {stable_mosaic.version = 11 : i64} {
  func.func @fused_parse_kernel(%arg0: memref<1x128xf32, #tpu.memory_space<vmem>>, %arg1: memref<16x384xf32, #tpu.memory_space<vmem>>, %arg2: memref<128x256xbf16, #tpu.memory_space<vmem>>, %arg3: memref<1x256xf32, #tpu.memory_space<vmem>>, %arg4: memref<256x512xbf16, #tpu.memory_space<vmem>>, %arg5: memref<1x512xf32, #tpu.memory_space<vmem>>, %arg6: memref<512x128xbf16, #tpu.memory_space<vmem>>, %arg7: memref<1x128xf32, #tpu.memory_space<vmem>>, %arg8: memref<128x384xbf16, #tpu.memory_space<vmem>>, %arg9: memref<384x256xbf16, #tpu.memory_space<vmem>>, %arg10: memref<1x256xf32, #tpu.memory_space<vmem>>, %arg11: memref<256x128xbf16, #tpu.memory_space<vmem>>, %arg12: memref<1x128xf32, #tpu.memory_space<vmem>>, %arg13: memref<128x128xbf16, #tpu.memory_space<vmem>>, %arg14: memref<1x128xf32, #tpu.memory_space<vmem>>, %arg15: memref<128x128xbf16, #tpu.memory_space<vmem>>, %arg16: memref<1x128xf32, #tpu.memory_space<vmem>>, %arg17: memref<128x128xbf16, #tpu.memory_space<vmem>>, %arg18: memref<1x128xf32, #tpu.memory_space<vmem>>, %arg19: memref<128x128xbf16, #tpu.memory_space<vmem>>, %arg20: memref<1x128xf32, #tpu.memory_space<vmem>>, %arg21: memref<1x128xf32, #tpu.memory_space<vmem>>) attributes {dimension_semantics = [], scalar_prefetch = 0 : i64, scratch_operands = 0 : i64, tpu.core_type = #tpu.core_type<tc>} {
    %c0 = arith.constant 0 : index
    %c0_0 = arith.constant 0 : index
    %0 = vector.load %arg0[%c0, %c0_0] : memref<1x128xf32, #tpu.memory_space<vmem>>, vector<1x128xf32>
    %1 = arith.truncf %0 : vector<1x128xf32> to vector<1x128xbf16>
    %c0_1 = arith.constant 0 : index
    %c0_2 = arith.constant 0 : index
    %2 = vector.load %arg2[%c0_1, %c0_2] : memref<128x256xbf16, #tpu.memory_space<vmem>>, vector<128x256xbf16>
    %cst = arith.constant dense<0.000000e+00> : vector<1x256xf32>
    %3 = tpu.matmul %1, %2, %cst {dimension_numbers = #tpu.dot_dimension_numbers<[1], [0], [0], [1], [0, 0, 1, 1], [], []>} : vector<1x128xbf16>, vector<128x256xbf16>, vector<1x256xf32> -> vector<1x256xf32>
    %c0_3 = arith.constant 0 : index
    %c0_4 = arith.constant 0 : index
    %4 = vector.load %arg3[%c0_3, %c0_4] : memref<1x256xf32, #tpu.memory_space<vmem>>, vector<1x256xf32>
    %5 = arith.addf %3, %4 : vector<1x256xf32>
    %6 = math.tanh %5 : vector<1x256xf32>
    %7 = arith.truncf %6 : vector<1x256xf32> to vector<1x256xbf16>
    %c0_5 = arith.constant 0 : index
    %c0_6 = arith.constant 0 : index
    %8 = vector.load %arg4[%c0_5, %c0_6] : memref<256x512xbf16, #tpu.memory_space<vmem>>, vector<256x512xbf16>
    %cst_7 = arith.constant dense<0.000000e+00> : vector<1x512xf32>
    %9 = tpu.matmul %7, %8, %cst_7 {dimension_numbers = #tpu.dot_dimension_numbers<[1], [0], [0], [1], [0, 0, 1, 1], [], []>} : vector<1x256xbf16>, vector<256x512xbf16>, vector<1x512xf32> -> vector<1x512xf32>
    %c0_8 = arith.constant 0 : index
    %c0_9 = arith.constant 0 : index
    %10 = vector.load %arg5[%c0_8, %c0_9] : memref<1x512xf32, #tpu.memory_space<vmem>>, vector<1x512xf32>
    %11 = arith.addf %9, %10 : vector<1x512xf32>
    %cst_10 = arith.constant 0.000000e+00 : f32
    %12 = vector.broadcast %cst_10 : f32 to vector<1x512xf32>
    %13 = arith.maximumf %11, %12 : vector<1x512xf32>
    %14 = math.absf %11 : vector<1x512xf32>
    %cst_11 = arith.constant 0.000000e+00 : f32
    %15 = vector.broadcast %cst_11 : f32 to vector<1x512xf32>
    %16 = arith.subf %15, %14 : vector<1x512xf32>
    %17 = math.exp %16 : vector<1x512xf32>
    %18 = math.log1p %17 : vector<1x512xf32>
    %19 = arith.addf %13, %18 : vector<1x512xf32>
    %20 = arith.truncf %19 : vector<1x512xf32> to vector<1x512xbf16>
    %c0_12 = arith.constant 0 : index
    %c0_13 = arith.constant 0 : index
    %21 = vector.load %arg6[%c0_12, %c0_13] : memref<512x128xbf16, #tpu.memory_space<vmem>>, vector<512x128xbf16>
    %cst_14 = arith.constant dense<0.000000e+00> : vector<1x128xf32>
    %22 = tpu.matmul %20, %21, %cst_14 {dimension_numbers = #tpu.dot_dimension_numbers<[1], [0], [0], [1], [0, 0, 1, 1], [], []>} : vector<1x512xbf16>, vector<512x128xbf16>, vector<1x128xf32> -> vector<1x128xf32>
    %c0_15 = arith.constant 0 : index
    %c0_16 = arith.constant 0 : index
    %23 = vector.load %arg7[%c0_15, %c0_16] : memref<1x128xf32, #tpu.memory_space<vmem>>, vector<1x128xf32>
    %24 = arith.addf %22, %23 : vector<1x128xf32>
    %25 = math.tanh %24 : vector<1x128xf32>
    %26 = arith.truncf %25 : vector<1x128xf32> to vector<1x128xbf16>
    %c0_17 = arith.constant 0 : index
    %c0_18 = arith.constant 0 : index
    %27 = vector.load %arg8[%c0_17, %c0_18] : memref<128x384xbf16, #tpu.memory_space<vmem>>, vector<128x384xbf16>
    %cst_19 = arith.constant dense<0.000000e+00> : vector<1x384xf32>
    %28 = tpu.matmul %26, %27, %cst_19 {dimension_numbers = #tpu.dot_dimension_numbers<[1], [0], [0], [1], [0, 0, 1, 1], [], []>} : vector<1x128xbf16>, vector<128x384xbf16>, vector<1x384xf32> -> vector<1x384xf32>
    %c0_20 = arith.constant 0 : index
    %c0_21 = arith.constant 0 : index
    %29 = vector.load %arg1[%c0_20, %c0_21] : memref<16x384xf32, #tpu.memory_space<vmem>>, vector<16x384xf32>
    %30 = vector.broadcast %28 : vector<1x384xf32> to vector<16x384xf32>
    %31 = arith.addf %29, %30 : vector<16x384xf32>
    %32 = math.tanh %31 : vector<16x384xf32>
    %33 = arith.truncf %32 : vector<16x384xf32> to vector<16x384xbf16>
    %c0_22 = arith.constant 0 : index
    %c0_23 = arith.constant 0 : index
    %34 = vector.load %arg9[%c0_22, %c0_23] : memref<384x256xbf16, #tpu.memory_space<vmem>>, vector<384x256xbf16>
    %cst_24 = arith.constant dense<0.000000e+00> : vector<16x256xf32>
    %35 = tpu.matmul %33, %34, %cst_24 {dimension_numbers = #tpu.dot_dimension_numbers<[1], [0], [0], [1], [0, 0, 1, 1], [], []>} : vector<16x384xbf16>, vector<384x256xbf16>, vector<16x256xf32> -> vector<16x256xf32>
    %c0_25 = arith.constant 0 : index
    %c0_26 = arith.constant 0 : index
    %36 = vector.load %arg10[%c0_25, %c0_26] : memref<1x256xf32, #tpu.memory_space<vmem>>, vector<1x256xf32>
    %37 = vector.broadcast %36 : vector<1x256xf32> to vector<16x256xf32>
    %38 = arith.addf %35, %37 : vector<16x256xf32>
    %cst_27 = arith.constant 0.000000e+00 : f32
    %39 = vector.broadcast %cst_27 : f32 to vector<16x256xf32>
    %40 = arith.maximumf %38, %39 : vector<16x256xf32>
    %41 = math.absf %38 : vector<16x256xf32>
    %cst_28 = arith.constant 0.000000e+00 : f32
    %42 = vector.broadcast %cst_28 : f32 to vector<16x256xf32>
    %43 = arith.subf %42, %41 : vector<16x256xf32>
    %44 = math.exp %43 : vector<16x256xf32>
    %45 = math.log1p %44 : vector<16x256xf32>
    %46 = arith.addf %40, %45 : vector<16x256xf32>
    %47 = arith.truncf %46 : vector<16x256xf32> to vector<16x256xbf16>
    %c0_29 = arith.constant 0 : index
    %c0_30 = arith.constant 0 : index
    %48 = vector.load %arg11[%c0_29, %c0_30] : memref<256x128xbf16, #tpu.memory_space<vmem>>, vector<256x128xbf16>
    %cst_31 = arith.constant dense<0.000000e+00> : vector<16x128xf32>
    %49 = tpu.matmul %47, %48, %cst_31 {dimension_numbers = #tpu.dot_dimension_numbers<[1], [0], [0], [1], [0, 0, 1, 1], [], []>} : vector<16x256xbf16>, vector<256x128xbf16>, vector<16x128xf32> -> vector<16x128xf32>
    %c0_32 = arith.constant 0 : index
    %c0_33 = arith.constant 0 : index
    %50 = vector.load %arg12[%c0_32, %c0_33] : memref<1x128xf32, #tpu.memory_space<vmem>>, vector<1x128xf32>
    %51 = vector.broadcast %50 : vector<1x128xf32> to vector<16x128xf32>
    %52 = arith.addf %49, %51 : vector<16x128xf32>
    %cst_34 = arith.constant 0.000000e+00 : f32
    %53 = vector.broadcast %cst_34 : f32 to vector<16x128xf32>
    %54 = arith.maximumf %52, %53 : vector<16x128xf32>
    %55 = math.absf %52 : vector<16x128xf32>
    %cst_35 = arith.constant 0.000000e+00 : f32
    %56 = vector.broadcast %cst_35 : f32 to vector<16x128xf32>
    %57 = arith.subf %56, %55 : vector<16x128xf32>
    %58 = math.exp %57 : vector<16x128xf32>
    %59 = math.log1p %58 : vector<16x128xf32>
    %60 = arith.addf %54, %59 : vector<16x128xf32>
    %61 = tpu.iota {dimensions = array<i32: 0>} : vector<16x1xi32>
    %c10_i32 = arith.constant 10 : i32
    %62 = vector.broadcast %c10_i32 : i32 to vector<16x1xi32>
    %63 = arith.cmpi slt, %61, %62 : vector<16x1xi32>
    %64 = vector.extract_strided_slice %60 {offsets = [0, 0], sizes = [16, 1], strides = [1, 1]} : vector<16x128xf32> to vector<16x1xf32>
    %cst_36 = arith.constant 0.000000e+00 : f32
    %65 = vector.broadcast %cst_36 : f32 to vector<16x1xf32>
    %66 = arith.select %63, %64, %65 : vector<16x1xi1>, vector<16x1xf32>
    %cst_37 = arith.constant dense<0.000000e+00> : vector<1xf32>
    %67 = vector.multi_reduction <add>, %66, %cst_37 [0] : vector<16x1xf32> to vector<1xf32>
    %68 = vector.shape_cast %67 : vector<1xf32> to vector<1x1xf32>
    %69 = vector.broadcast %68 : vector<1x1xf32> to vector<16x1xf32>
    %70 = arith.divf %66, %69 : vector<16x1xf32>
    %cst_38 = arith.constant dense<0xFF800000> : vector<1xf32>
    %71 = vector.multi_reduction <maximumf>, %70, %cst_38 [0] : vector<16x1xf32> to vector<1xf32>
    %72 = vector.shape_cast %71 : vector<1xf32> to vector<1x1xf32>
    %73 = math.log %72 : vector<1x1xf32>
    %cst_39 = arith.constant 0.000000e+00 : f32
    %74 = vector.broadcast %cst_39 : f32 to vector<1x1xf32>
    %75 = arith.subf %74, %73 : vector<1x1xf32>
    %76 = arith.sitofp %61 : vector<16x1xi32> to vector<16x1xf32>
    %77 = vector.broadcast %72 : vector<1x1xf32> to vector<16x1xf32>
    %78 = arith.cmpf oeq, %70, %77 : vector<16x1xf32>
    %cst_40 = arith.constant 1.600000e+01 : f32
    %79 = vector.broadcast %cst_40 : f32 to vector<16x1xf32>
    %80 = arith.select %78, %76, %79 : vector<16x1xi1>, vector<16x1xf32>
    %cst_41 = arith.constant dense<0x7F800000> : vector<1xf32>
    %81 = vector.multi_reduction <minimumf>, %80, %cst_41 [0] : vector<16x1xf32> to vector<1xf32>
    %82 = vector.shape_cast %81 : vector<1xf32> to vector<1x1xf32>
    %83 = tpu.iota {dimensions = array<i32: 1>} : vector<16x128xi32>
    %c80_i32 = arith.constant 80 : i32
    %84 = vector.broadcast %c80_i32 : i32 to vector<16x1xi32>
    %85 = arith.addi %61, %84 : vector<16x1xi32>
    %86 = vector.broadcast %85 : vector<16x1xi32> to vector<16x128xi32>
    %87 = arith.cmpi eq, %83, %86 : vector<16x128xi32>
    %88 = arith.extui %87 : vector<16x128xi1> to vector<16x128xi32>
    %89 = arith.sitofp %88 : vector<16x128xi32> to vector<16x128xf32>
    %90 = vector.broadcast %70 : vector<16x1xf32> to vector<16x128xf32>
    %91 = arith.mulf %90, %89 : vector<16x128xf32>
    %cst_42 = arith.constant dense<0.000000e+00> : vector<128xf32>
    %92 = vector.multi_reduction <add>, %91, %cst_42 [0] : vector<16x128xf32> to vector<128xf32>
    %93 = vector.shape_cast %92 : vector<128xf32> to vector<1x128xf32>
    %c0_43 = arith.constant 0 : index
    %c0_44 = arith.constant 0 : index
    %94 = vector.load %arg13[%c0_43, %c0_44] : memref<128x128xbf16, #tpu.memory_space<vmem>>, vector<128x128xbf16>
    %cst_45 = arith.constant dense<0.000000e+00> : vector<1x128xf32>
    %95 = tpu.matmul %1, %94, %cst_45 {dimension_numbers = #tpu.dot_dimension_numbers<[1], [0], [0], [1], [0, 0, 1, 1], [], []>} : vector<1x128xbf16>, vector<128x128xbf16>, vector<1x128xf32> -> vector<1x128xf32>
    %c0_46 = arith.constant 0 : index
    %c0_47 = arith.constant 0 : index
    %96 = vector.load %arg14[%c0_46, %c0_47] : memref<1x128xf32, #tpu.memory_space<vmem>>, vector<1x128xf32>
    %97 = arith.addf %95, %96 : vector<1x128xf32>
    %98 = arith.addf %97, %25 : vector<1x128xf32>
    %99 = arith.truncf %98 : vector<1x128xf32> to vector<1x128xbf16>
    %c0_48 = arith.constant 0 : index
    %c0_49 = arith.constant 0 : index
    %100 = vector.load %arg15[%c0_48, %c0_49] : memref<128x128xbf16, #tpu.memory_space<vmem>>, vector<128x128xbf16>
    %cst_50 = arith.constant dense<0.000000e+00> : vector<1x128xf32>
    %101 = tpu.matmul %99, %100, %cst_50 {dimension_numbers = #tpu.dot_dimension_numbers<[1], [0], [0], [1], [0, 0, 1, 1], [], []>} : vector<1x128xbf16>, vector<128x128xbf16>, vector<1x128xf32> -> vector<1x128xf32>
    %c0_51 = arith.constant 0 : index
    %c0_52 = arith.constant 0 : index
    %102 = vector.load %arg16[%c0_51, %c0_52] : memref<1x128xf32, #tpu.memory_space<vmem>>, vector<1x128xf32>
    %103 = arith.addf %101, %102 : vector<1x128xf32>
    %cst_53 = arith.constant 0.000000e+00 : f32
    %104 = vector.broadcast %cst_53 : f32 to vector<1x128xf32>
    %105 = arith.subf %104, %103 : vector<1x128xf32>
    %106 = math.exp %105 : vector<1x128xf32>
    %cst_54 = arith.constant 1.000000e+00 : f32
    %107 = vector.broadcast %cst_54 : f32 to vector<1x128xf32>
    %108 = arith.addf %107, %106 : vector<1x128xf32>
    %cst_55 = arith.constant 1.000000e+00 : f32
    %109 = vector.broadcast %cst_55 : f32 to vector<1x128xf32>
    %110 = arith.divf %109, %108 : vector<1x128xf32>
    %111 = arith.truncf %110 : vector<1x128xf32> to vector<1x128xbf16>
    %c0_56 = arith.constant 0 : index
    %c0_57 = arith.constant 0 : index
    %112 = vector.load %arg17[%c0_56, %c0_57] : memref<128x128xbf16, #tpu.memory_space<vmem>>, vector<128x128xbf16>
    %cst_58 = arith.constant dense<0.000000e+00> : vector<1x128xf32>
    %113 = tpu.matmul %111, %112, %cst_58 {dimension_numbers = #tpu.dot_dimension_numbers<[1], [0], [0], [1], [0, 0, 1, 1], [], []>} : vector<1x128xbf16>, vector<128x128xbf16>, vector<1x128xf32> -> vector<1x128xf32>
    %c0_59 = arith.constant 0 : index
    %c0_60 = arith.constant 0 : index
    %114 = vector.load %arg18[%c0_59, %c0_60] : memref<1x128xf32, #tpu.memory_space<vmem>>, vector<1x128xf32>
    %115 = arith.addf %113, %114 : vector<1x128xf32>
    %116 = math.tanh %115 : vector<1x128xf32>
    %117 = arith.truncf %116 : vector<1x128xf32> to vector<1x128xbf16>
    %c0_61 = arith.constant 0 : index
    %c0_62 = arith.constant 0 : index
    %118 = vector.load %arg19[%c0_61, %c0_62] : memref<128x128xbf16, #tpu.memory_space<vmem>>, vector<128x128xbf16>
    %cst_63 = arith.constant dense<0.000000e+00> : vector<1x128xf32>
    %119 = tpu.matmul %117, %118, %cst_63 {dimension_numbers = #tpu.dot_dimension_numbers<[1], [0], [0], [1], [0, 0, 1, 1], [], []>} : vector<1x128xbf16>, vector<128x128xbf16>, vector<1x128xf32> -> vector<1x128xf32>
    %c0_64 = arith.constant 0 : index
    %c0_65 = arith.constant 0 : index
    %120 = vector.load %arg20[%c0_64, %c0_65] : memref<1x128xf32, #tpu.memory_space<vmem>>, vector<1x128xf32>
    %121 = arith.addf %119, %120 : vector<1x128xf32>
    %cst_66 = arith.constant 0.000000e+00 : f32
    %122 = vector.broadcast %cst_66 : f32 to vector<1x128xf32>
    %123 = arith.maximumf %121, %122 : vector<1x128xf32>
    %124 = math.absf %121 : vector<1x128xf32>
    %cst_67 = arith.constant 0.000000e+00 : f32
    %125 = vector.broadcast %cst_67 : f32 to vector<1x128xf32>
    %126 = arith.subf %125, %124 : vector<1x128xf32>
    %127 = math.exp %126 : vector<1x128xf32>
    %128 = math.log1p %127 : vector<1x128xf32>
    %129 = arith.addf %123, %128 : vector<1x128xf32>
    %130 = vector.extract_strided_slice %129 {offsets = [0, 0], sizes = [1, 1], strides = [1, 1]} : vector<1x128xf32> to vector<1x1xf32>
    %131 = tpu.iota {dimensions = array<i32: 1>} : vector<1x128xi32>
    %132 = arith.addf %25, %93 : vector<1x128xf32>
    %c64_i32 = arith.constant 64 : i32
    %133 = vector.broadcast %c64_i32 : i32 to vector<1x128xi32>
    %134 = arith.cmpi eq, %131, %133 : vector<1x128xi32>
    %135 = vector.shape_cast %75 : vector<1x1xf32> to vector<1x1xf32>
    %136 = vector.broadcast %135 : vector<1x1xf32> to vector<1x128xf32>
    %137 = arith.select %134, %136, %132 : vector<1x128xi1>, vector<1x128xf32>
    %c65_i32 = arith.constant 65 : i32
    %138 = vector.broadcast %c65_i32 : i32 to vector<1x128xi32>
    %139 = arith.cmpi eq, %131, %138 : vector<1x128xi32>
    %140 = vector.shape_cast %130 : vector<1x1xf32> to vector<1x1xf32>
    %141 = vector.broadcast %140 : vector<1x1xf32> to vector<1x128xf32>
    %142 = arith.select %139, %141, %137 : vector<1x128xi1>, vector<1x128xf32>
    %c66_i32 = arith.constant 66 : i32
    %143 = vector.broadcast %c66_i32 : i32 to vector<1x128xi32>
    %144 = arith.cmpi eq, %131, %143 : vector<1x128xi32>
    %145 = vector.shape_cast %82 : vector<1x1xf32> to vector<1x1xf32>
    %146 = vector.broadcast %145 : vector<1x1xf32> to vector<1x128xf32>
    %147 = arith.select %144, %146, %142 : vector<1x128xi1>, vector<1x128xf32>
    %c0_68 = arith.constant 0 : index
    %c0_69 = arith.constant 0 : index
    %148 = vector.load %arg21[%c0_68, %c0_69] : memref<1x128xf32, #tpu.memory_space<vmem>>, vector<1x128xf32>
    tpu.vector_store %arg21[%c0_68, %c0_69], %147 {strides = array<i32>} : memref<1x128xf32, #tpu.memory_space<vmem>>, vector<1x128xf32>,
    return
  }
}

</mosaic_0001>

<bundles_post_ra>
// kernel: fused_parse_step.1
= control target key start
LH: loop header
LB: loop body
LE: loop exit
PB: predicated region body
PF: predicated region fallthrough
CT: control target
= control target key end

     0   :  { %s4237_s0 = inlined_call_operand.vmem [shape: f32[1,128], index: 0, kind: input, shape index: {}]   ;;  %s4238_s1 = inlined_call_operand.hbm [shape: f32[16,384], index: 1, kind: input, shape index: {}]   ;;  %s4239_s2 = inlined_call_operand.hbm [shape: bf16[128,256], index: 2, kind: input, shape index: {}]   ;;  %s4240_s3 = inlined_call_operand.vmem [shape: f32[1,256], index: 3, kind: input, shape index: {}]   ;;  %s4241_s4 = inlined_call_operand.hbm [shape: bf16[256,512], index: 4, kind: input, shape index: {}]   ;;  %s4242_s5 = inlined_call_operand.vmem [shape: f32[1,512], index: 5, kind: input, shape index: {}]   ;;  %s4243_s6 = inlined_call_operand.hbm [shape: bf16[512,128], index: 6, kind: input, shape index: {}]   ;;  %s4244_s7 = inlined_call_operand.hbm [shape: f32[1,128], index: 7, kind: input, shape index: {}]   ;;  %s4245_s8 = inlined_call_operand.hbm [shape: bf16[128,384], index: 8, kind: input, shape index: {}]   ;;  %s4246_s9 = inlined_call_operand.hbm [shape: bf16[384,256], index: 9, kind: input, shape index: {}]   ;;  %s4247_s10 = inlined_call_operand.vmem [shape: f32[1,256], index: 10, kind: input, shape index: {}]   ;;  %s4248_s11 = inlined_call_operand.hbm [shape: bf16[256,128], index: 11, kind: input, shape index: {}]   ;;  %s4249_s12 = inlined_call_operand.vmem [shape: f32[1,128], index: 12, kind: input, shape index: {}]   ;;  %s4250_s13 = inlined_call_operand.hbm [shape: bf16[128,128], index: 13, kind: input, shape index: {}]   ;;  %s4251_s14 = inlined_call_operand.vmem [shape: f32[1,128], index: 14, kind: input, shape index: {}]   ;;  %s4252_s15 = inlined_call_operand.hbm [shape: bf16[128,128], index: 15, kind: input, shape index: {}]   ;;  %s4253_s16 = inlined_call_operand.vmem [shape: f32[1,128], index: 16, kind: input, shape index: {}]   ;;  %s4254_s17 = inlined_call_operand.hbm [shape: bf16[128,128], index: 17, kind: input, shape index: {}]   ;;  %s4255_s18 = inlined_call_operand.vmem [shape: f32[1,128], index: 18, kind: input, shape index: {}]   ;;  %s4256_s19 = inlined_call_operand.hbm [shape: bf16[128,128], index: 19, kind: input, shape index: {}]   ;;  %s4257_s20 = inlined_call_operand.vmem [shape: f32[1,128], index: 20, kind: input, shape index: {}]   ;;  %s4258_s21 = inlined_call_operand.vmem [shape: f32[1,128], index: 21, kind: output, shape index: {}]  }
   0x1   :  { %4260 = sst [smem:[#allocation28_spill]] %s4237_s0 }
   0x2   :  { %4261 = sst [smem:[#allocation29_spill]] %s4238_s1 }
   0x3   :  { %4262 = sst [smem:[#allocation30_spill]] %s4239_s2 }
   0x4   :  { %4263 = sst [smem:[#allocation31_spill]] %s4240_s3 }
   0x5   :  { %4264 = sst [smem:[#allocation32_spill]] %s4241_s4 }
   0x6   :  { %4265 = sst [smem:[#allocation33_spill]] %s4242_s5 }
   0x7   :  { %26 = vsyncpa [#allocation3], 0 }
   0x8   :  { %27 = vsyncpa [#allocation5], 0 }
   0x9   :  { %28 = vsyncpa [#allocation8], 0 }
   0xa   :  { %29 = vsyncpa [#allocation11], 0 }
   0xb   :  { %30 = vsyncpa [#allocation14], 0 }
   0xc   :  { %31 = vsyncpa [#allocation17], 0 }
   0xd   :  { %32 = vsyncpa [#allocation20], 0  ;;  %s3863_s2 = smov [#allocation4]  }
   0xe   :  { %s52_s25 = sshll.u32 %s3863_s2, 4  ;;  %s53_s25 = int_to_ptr.vmem [resolvable:$true] %s52_s25 }
   0xf   :  { %s3617_s26 = scalar_lea.vmem %s53_s25, 2048  ;;  %p3622_p1 = scmp.lt.s32.totalorder %s53_s25, %s53_s25 }
  0x10   :  { %p3618_p0 = scmp.ne.s32.totalorder %s53_s25, %s3617_s26  ;;  %p3623_p2 = scmp.lt.s32.totalorder %s3617_s26, %s3617_s26 }
  0x12   :  { %p3624_p3 = por %p3623_p2, %p3622_p1 }
  0x14   :  { %p3625_p4 = pnand %p3624_p3, %p3618_p0 }
  0x16   :  { %3628 = shalt.err (!%p3625_p4)
}
  0x17   :  { %s4259_s27 = smov 128   ;;  %s3865_s3 = smov 8  }
  0x18   :  { %s4266_s0 = sld [smem:[#allocation30_spill]]  ;;  %s3866_s4 = smov [#allocation7]  }
  0x19   :  { %s80_s30 = sshll.u32 %s3866_s4, 4  ;;  %s81_s30 = int_to_ptr.vmem [resolvable:$true] %s80_s30 }
  0x1a   :  { %s3637_s5 = scalar_lea.vmem %s81_s30, 4096  ;;  %p3642_p6 = scmp.lt.s32.totalorder %s81_s30, %s81_s30 }
  0x1b   :  { %p3638_p5 = scmp.ne.s32.totalorder %s81_s30, %s3637_s5  ;;  %p3643_p7 = scmp.lt.s32.totalorder %s3637_s5, %s3637_s5 }
  0x1d   :  { %p3644_p8 = por %p3643_p7, %p3642_p6 }
  0x1e   :  { %58 = dma.hbm_to_vmem [thread:$0]  %s4266_s0, 2048, %s53_s25, [#allocation5], %s4259_s27, %s4259_s27, %s3865_s3  }
  0x1f   :  { %p3645_p9 = pnand %p3644_p8, %p3638_p5 }
  0x21   :  { %3648 = shalt.err (!%p3645_p9)
}
  0x22   :  { %s3867_s22 = smov 64   ;;  %s3868_s23 = smov 4  }
  0x23   :  { %86 = dma.hbm_to_vmem [thread:$0]  %s4243_s6, 4096, %s81_s30, [#allocation8], %s3867_s22, %s3867_s22, %s3868_s23  }
  0x24   :  { %s3869_s2 = smov [#allocation10]  }
  0x25   :  { %s102_s25 = sshll.u32 %s3869_s2, 4  ;;  %s103_s25 = int_to_ptr.vmem [resolvable:$true] %s102_s25 }
  0x26   :  { %s3657_s26 = scalar_lea.vmem %s103_s25, 3072  ;;  %p3662_p11 = scmp.lt.s32.totalorder %s103_s25, %s103_s25 }
  0x27   :  { %p3658_p10 = scmp.ne.s32.totalorder %s103_s25, %s3657_s26  ;;  %p3663_p12 = scmp.lt.s32.totalorder %s3657_s26, %s3657_s26 }
  0x29   :  { %p3664_p13 = por %p3663_p12, %p3662_p11 }
  0x2b   :  { %p3665_p0 = pnand %p3664_p13, %p3658_p10 }
  0x2d   :  { %3668 = shalt.err (!%p3665_p0)
}
  0x2e   :  { %s3870_s28 = smov 192   ;;  %s3871_s29 = smov 12  }
  0x2f   :  { %108 = dma.hbm_to_vmem [thread:$0]  %s4245_s8, 3072, %s103_s25, [#allocation11], %s3870_s28, %s3870_s28, %s3871_s29  }
  0x30   :  { %s3872_s5 = smov [#allocation13]   ;;  %s3873_s6 = smov [#allocation16]  }
  0x31   :  { %s128_s27 = sshll.u32 %s3872_s5, 4  ;;  %s156_s30 = sshll.u32 %s3873_s6, 4  ;;  %s129_s27 = int_to_ptr.vmem [resolvable:$true] %s128_s27  ;;  %s157_s30 = int_to_ptr.vmem [resolvable:$true] %s156_s30 }
  0x32   :  { %s3677_s1 = scalar_lea.vmem %s129_s27, 2048  ;;  %p3682_p2 = scmp.lt.s32.totalorder %s129_s27, %s129_s27 }
  0x33   :  { %p3678_p1 = scmp.ne.s32.totalorder %s129_s27, %s3677_s1  ;;  %p3683_p3 = scmp.lt.s32.totalorder %s3677_s1, %s3677_s1 }
  0x35   :  { %p3684_p4 = por %p3683_p3, %p3682_p2 }
  0x37   :  { %p3685_p5 = pnand %p3684_p4, %p3678_p1 }
  0x39   :  { %3688 = shalt.err (!%p3685_p5)
}
  0x3a   :  { %134 = dma.hbm_to_vmem [thread:$0]  %s4248_s11, 2048, %s129_s27, [#allocation14], %s3867_s22, %s3867_s22, %s3868_s23  }
  0x3b   :  { %s3697_s8 = scalar_lea.vmem %s157_s30, 1024  ;;  %p3702_p7 = scmp.lt.s32.totalorder %s157_s30, %s157_s30 }
  0x3c   :  { %p3698_p6 = scmp.ne.s32.totalorder %s157_s30, %s3697_s8  ;;  %p3703_p8 = scmp.lt.s32.totalorder %s3697_s8, %s3697_s8 }
  0x3e   :  { %p3704_p9 = por %p3703_p8, %p3702_p7 }
  0x40   :  { %p3705_p10 = pnand %p3704_p9, %p3698_p6 }
  0x42   :  { %3708 = shalt.err (!%p3705_p10)
}
  0x43   :  { %162 = dma.hbm_to_vmem [thread:$0]  %s4252_s15, 1024, %s157_s30, [#allocation17], %s3867_s22, %s3867_s22, %s3868_s23  }
  0x44   :  { %s3874_s28 = smov [#allocation2]  }
  0x45   :  { %s40_s29 = sshll.u32 %s3874_s28, 4  ;;  %s41_s29 = int_to_ptr.vmem [resolvable:$true] %s40_s29 }
  0x46   :  { %s3717_s0 = scalar_lea.vmem %s41_s29, 768  ;;  %p3722_p12 = scmp.lt.s32.totalorder %s41_s29, %s41_s29 }
  0x47   :  { %p3718_p11 = scmp.ne.s32.totalorder %s41_s29, %s3717_s0  ;;  %p3723_p13 = scmp.lt.s32.totalorder %s3717_s0, %s3717_s0 }
  0x49   :  { %p3724_p0 = por %p3723_p13, %p3722_p12 }
  0x4b   :  { %p3725_p1 = pnand %p3724_p0, %p3718_p11 }
  0x4d   :  { %3728 = shalt.err (!%p3725_p1)
}
  0x4e   :  { %s3875_s11 = smov 384   ;;  %s3876_s27 = smov 24  }
  0x4f   :  { %s4267_s6 = sld [smem:[#allocation29_spill]]  ;;  %s3877_s1 = smov [#allocation6]  }
  0x50   :  { %s66_s24 = sshll.u32 %s3877_s1, 4  ;;  %s67_s24 = int_to_ptr.vmem [resolvable:$true] %s66_s24 }
  0x51   :  { %s3737_s15 = scalar_lea.vmem %s67_s24, 8192  ;;  %p3742_p3 = scmp.lt.s32.totalorder %s67_s24, %s67_s24 }
  0x52   :  { %p3738_p2 = scmp.ne.s32.totalorder %s67_s24, %s3737_s15  ;;  %p3743_p4 = scmp.lt.s32.totalorder %s3737_s15, %s3737_s15 }
  0x54   :  { %p3744_p5 = por %p3743_p4, %p3742_p3 }
  0x55   :  { %46 = dma.hbm_to_vmem [thread:$0]  %s4267_s6, 768, %s41_s29, [#allocation3], %s3875_s11, %s3875_s11, %s3876_s27  }
  0x56   :  { %p3745_p6 = pnand %p3744_p5, %p3738_p2 }
  0x58   :  { %3748 = shalt.err (!%p3745_p6)
}
  0x59   :  { %s3878_s30 = smov 256   ;;  %s3879_s2 = smov 16  }
  0x5a   :  { %s4268_s26 = sld [smem:[#allocation32_spill]]  ;;  %s3880_s28 = smov [#allocation9]  }
  0x5b   :  { %s93_s0 = sshll.u32 %s3880_s28, 4  ;;  %s3881_s29 = smov [#allocation12]   ;;  %s94_s0 = int_to_ptr.vmem [resolvable:$true] %s93_s0 }
  0x5c   :  { %s114_s11 = sshll.u32 %s3881_s29, 4  ;;  %s3757_s27 = scalar_lea.vmem %s94_s0, 16  ;;  %s115_s11 = int_to_ptr.vmem [resolvable:$true] %s114_s11 }
  0x5d   :  { %p3758_p7 = scmp.ne.s32.totalorder %s94_s0, %s3757_s27  ;;  %s3761_s4 = scalar_lea.vmem %s94_s0, 32 }
  0x5e   :  { %p3762_p8 = scmp.lt.s32.totalorder %s94_s0, %s94_s0  ;;  %p3763_p9 = scmp.lt.s32.totalorder %s3761_s4, %s3757_s27 }
  0x60   :  { %72 = dma.hbm_to_vmem [thread:$0]  %s4268_s26, 8192, %s67_s24, [#allocation5], %s3878_s30, %s3878_s30, %s3879_s2  }
  0x61   :  { %p3764_p10 = por %p3763_p9, %p3762_p8 }
  0x63   :  { %p3765_p11 = pnand %p3764_p10, %p3758_p7 }
  0x65   :  { %3768 = shalt.err (!%p3765_p11)
}
  0x66   :  { %96 = dma.hbm_to_vmem [thread:$0]  %s4244_s7, 16, %s94_s0, [#allocation8]  }
  0x67   :  { %s3777_s1 = scalar_lea.vmem %s115_s11, 6144  ;;  %p3782_p13 = scmp.lt.s32.totalorder %s115_s11, %s115_s11 }
  0x68   :  { %p3778_p12 = scmp.ne.s32.totalorder %s115_s11, %s3777_s1  ;;  %p3783_p0 = scmp.lt.s32.totalorder %s3777_s1, %s3777_s1 }
  0x6a   :  { %p3784_p1 = por %p3783_p0, %p3782_p13 }
  0x6c   :  { %p3785_p2 = pnand %p3784_p1, %p3778_p12 }
  0x6e   :  { %3788 = shalt.err (!%p3785_p2)
}
  0x6f   :  { %s4269_s24 = smov 128   ;;  %s3882_s2 = smov [#allocation15]  }
  0x70   :  { %120 = dma.hbm_to_vmem [thread:$0]  %s4246_s9, 6144, %s115_s11, [#allocation11], %s4269_s24, %s4269_s24, %s3865_s3  }
  0x71   :  { %s142_s8 = sshll.u32 %s3882_s2, 4  ;;  %s3883_s25 = smov [#allocation18]   ;;  %s143_s8 = int_to_ptr.vmem [resolvable:$true] %s142_s8 }
  0x72   :  { %s170_s7 = sshll.u32 %s3883_s25, 4  ;;  %s3797_s26 = scalar_lea.vmem %s143_s8, 1024  ;;  %s171_s7 = int_to_ptr.vmem [resolvable:$true] %s170_s7 }
  0x73   :  { %p3798_p3 = scmp.ne.s32.totalorder %s143_s8, %s3797_s26  ;;  %p3802_p4 = scmp.lt.s32.totalorder %s143_s8, %s143_s8 }
  0x74   :  { %p3803_p5 = scmp.lt.s32.totalorder %s3797_s26, %s3797_s26 }
  0x76   :  { %p3804_p6 = por %p3803_p5, %p3802_p4 }
  0x78   :  { %p3805_p7 = pnand %p3804_p6, %p3798_p3 }
  0x7a   :  { %3808 = shalt.err (!%p3805_p7)
}
  0x7b   :  { %148 = dma.hbm_to_vmem [thread:$0]  %s4250_s13, 1024, %s143_s8, [#allocation14], %s3867_s22, %s3867_s22, %s3868_s23  }
  0x7c   :  { %s3817_s9 = scalar_lea.vmem %s171_s7, 1024  ;;  %p3822_p9 = scmp.lt.s32.totalorder %s171_s7, %s171_s7 }
  0x7d   :  { %p3818_p8 = scmp.ne.s32.totalorder %s171_s7, %s3817_s9  ;;  %p3823_p10 = scmp.lt.s32.totalorder %s3817_s9, %s3817_s9 }
  0x7f   :  { %p3824_p11 = por %p3823_p10, %p3822_p9 }
  0x81   :  { %p3825_p12 = pnand %p3824_p11, %p3818_p8 }
  0x83   :  { %3828 = shalt.err (!%p3825_p12)
}
  0x84   :  { %176 = dma.hbm_to_vmem [thread:$0]  %s4254_s17, 1024, %s171_s7, [#allocation17], %s3867_s22, %s3867_s22, %s3868_s23  }
  0x85   :  { %s3884_s11 = smov [#allocation19]  }
  0x86   :  { %s184_s27 = sshll.u32 %s3884_s11, 4  ;;  %s185_s27 = int_to_ptr.vmem [resolvable:$true] %s184_s27 }
  0x87   :  { %s3837_s4 = scalar_lea.vmem %s185_s27, 1024  ;;  %p3842_p0 = scmp.lt.s32.totalorder %s185_s27, %s185_s27 }
  0x88   :  { %p3838_p13 = scmp.ne.s32.totalorder %s185_s27, %s3837_s4  ;;  %p3843_p1 = scmp.lt.s32.totalorder %s3837_s4, %s3837_s4 }
  0x8a   :  { %p3844_p2 = por %p3843_p1, %p3842_p0 }
  0x8c   :  { %p3845_p3 = pnand %p3844_p2, %p3838_p13 }
  0x8e   :  { %3848 = shalt.err (!%p3845_p3)
}
  0x8f   :  { %190 = dma.hbm_to_vmem [thread:$0]  %s4256_s19, 1024, %s185_s27, [#allocation20], %s3867_s22, %s3867_s22, %s3868_s23  }
  0x90   :  { %3849 = dma.done.wait [#allocation3], 768  }
  0x91   :  { %3850 = vsyncadd [#allocation3], 4294966528 }
  0x92   :  { %3851 = dma.done.wait [#allocation5], 10240  }
  0x93   :  { %3852 = vsyncadd [#allocation5], 4294957056 }
  0x94   :  { %3853 = dma.done.wait [#allocation8], 4112  }
  0x95   :  { %3854 = vsyncadd [#allocation8], 4294963184 }
  0x96   :  { %3855 = dma.done.wait [#allocation11], 9216  }
  0x97   :  { %3856 = vsyncadd [#allocation11], 4294958080 }
  0x98   :  { %3857 = dma.done.wait [#allocation14], 3072  }
  0x99   :  { %3858 = vsyncadd [#allocation14], 4294964224 }
  0x9a   :  { %3859 = dma.done.wait [#allocation17], 2048  }
  0x9b   :  { %3860 = vsyncadd [#allocation17], 4294965248 }
  0x9c   :  { %3861 = dma.done.wait [#allocation20], 1024  }
  0x9d   :  { %3862 = vsyncadd [#allocation20], 4294966272  ;;  %v3885_v0 = vmov 0   ;;  %v3233_v1 = vld [vmem:[#allocation4 + $0x74] ss:$8 sps:$4 sm:$0xff]   ;;  %s4270_s22 = sld [smem:[#allocation28_spill]] }
  0x9e   :  { %372 = vmatprep.mubr.bf16.mxu0 %v3885_v0  ;;  %3231 = vset.pattern.permute.xlu0 %v3885_v0  ;;  %v3235_v2 = vld [vmem:[#allocation4 + $0x70] ss:$8 sps:$4 sm:$0xff]   ;;  %v3236_v3 = vld [vmem:[#allocation4 + $0x64] ss:$8 sps:$4 sm:$0xff]   ;;  %v3238_v4 = vld [vmem:[#allocation4 + $0x60] ss:$8 sps:$4 sm:$0xff]  }
  0x9f   :  { %3232 = vset.pattern.permute.xlu1 %v3885_v0  ;;  %340 = vmatprep.subr.bf16.mxu0 %v3233_v1  ;;  %v3239_v5 = vld [vmem:[#allocation4 + $0x54] ss:$8 sps:$4 sm:$0xff]   ;;  %v3241_v6 = vld [vmem:[#allocation4 + $0x50] ss:$8 sps:$4 sm:$0xff]   ;;  %v3242_v7 = vld [vmem:[#allocation4 + $0x44] ss:$8 sps:$4 sm:$0xff]  }
  0xa0   :  { %341 = vmatpush1.bf16.msra.mxu0 %v3235_v2  ;;  %v3244_v8 = vld [vmem:[#allocation4 + $0x40] ss:$8 sps:$4 sm:$0xff]   ;;  %v3257_v9 = vld [vmem:[#allocation6 + $0xe4] ss:$16 sps:$4 sm:$0xff]   ;;  %v3247_v13 = vld [vmem:[#allocation4 + $0x30] ss:$8 sps:$4 sm:$0xff]  }
  0xa1   :  { %342 = vmatprep.subr.bf16.mxu0 %v3236_v3  ;;  %v3245_v10 = vld [vmem:[#allocation4 + $0x34] ss:$8 sps:$4 sm:$0xff]   ;;  %791 = vmatprep.subr.bf16.mxu1 %v3257_v9  ;;  %v3262_v11 = vld [vmem:[#allocation6 + $0xe0] ss:$16 sps:$4 sm:$0xff]   ;;  %v3248_v14 = vld [vmem:[#allocation4 + $0x24] ss:$8 sps:$4 sm:$0xff]  }
  0xa2   :  { %v3263_v12 = vld [vmem:[#allocation6 + $0xc4] ss:$16 sps:$4 sm:$0xff]   ;;  %792 = vmatpush1.bf16.msra.mxu1 %v3262_v11  ;;  %v3268_v15 = vld [vmem:[#allocation6 + $0xc0] ss:$16 sps:$4 sm:$0xff]   ;;  %v3261_v27 = vld [vmem:[#allocation6 + $0xec] ss:$16 sps:$4 sm:$0xff]  }
  0xa3   :  { %793 = vmatprep.subr.bf16.mxu1 %v3263_v12  ;;  %v3269_v16 = vld [vmem:[#allocation6 + $0xa4] ss:$16 sps:$4 sm:$0xff]   ;;  %v3250_v17 = vld [vmem:[#allocation4 + $0x20] ss:$8 sps:$4 sm:$0xff]   ;;  %v3253_v21 = vld [vmem:[#allocation4 + $0x10] ss:$8 sps:$4 sm:$0xff]  }
  0xa4   :  { %343 = vmatpush1.bf16.msra.mxu0 %v3238_v4  ;;  %v3251_v18 = vld [vmem:[#allocation4 + $0x14] ss:$8 sps:$4 sm:$0xff]   ;;  %v3274_v19 = vld [vmem:[#allocation6 + $0xa0] ss:$16 sps:$4 sm:$0xff]   ;;  %v3254_v22 = vld [vmem:[#allocation4 + $0x4] ss:$8 sps:$4 sm:$0xff]  }
  0xa5   :  { %344 = vmatprep.subr.bf16.mxu0 %v3239_v5  ;;  %v3275_v20 = vld [vmem:[#allocation6 + $0x84] ss:$16 sps:$4 sm:$0xff]   ;;  %v3280_v23 = vld [vmem:[#allocation6 + $0x80] ss:$16 sps:$4 sm:$0xff]   ;;  %v3259_v31 = vld [vmem:[#allocation6 + $0xe8] ss:$16 sps:$4 sm:$0xff]  }
  0xa6   :  { %794 = vmatpush1.bf16.msra.mxu1 %v3268_v15  ;;  %v3281_v24 = vld [vmem:[#allocation6 + $0x64] ss:$16 sps:$4 sm:$0xff]   ;;  %v3256_v25 = vld [vmem:[#allocation4] ss:$8 sps:$4 sm:$0xff]   ;;  %v230_v26 = vld [vmem:[%s4270_s22] sm:$0x1] }
  0xa7   :  { %795 = vmatprep.subr.bf16.mxu1 %v3269_v16  ;;  %v3286_v28 = vld [vmem:[#allocation6 + $0x60] ss:$16 sps:$4 sm:$0xff]   ;;  %v3287_v29 = vld [vmem:[#allocation6 + $0x44] ss:$16 sps:$4 sm:$0xff]   ;;  %v4064_v30 = vpack.c.bf16 %v230_v26, %v230_v26  ;;  %v3267_v32 = vld [vmem:[#allocation6 + $0xcc] ss:$16 sps:$4 sm:$0xff]  }
  0xa8   :  { %345 = vmatpush1.bf16.msra.mxu0 %v3241_v6  ;;  %v3292_v33 = vld [vmem:[#allocation6 + $0x40] ss:$16 sps:$4 sm:$0xff]   ;;  %v3293_v34 = vld [vmem:[#allocation6 + $0x24] ss:$16 sps:$4 sm:$0xff]   ;;  %v3265_v35 = vld [vmem:[#allocation6 + $0xc8] ss:$16 sps:$4 sm:$0xff]  }
  0xa9   :  { %346 = vmatprep.subr.bf16.mxu0 %v3242_v7  ;;  %v3273_v36 = vld [vmem:[#allocation6 + $0xac] ss:$16 sps:$4 sm:$0xff]   ;;  %v3298_v37 = vld [vmem:[#allocation6 + $0x20] ss:$16 sps:$4 sm:$0xff]   ;;  %v3299_v38 = vld [vmem:[#allocation6 + $0x4] ss:$16 sps:$4 sm:$0xff]  }
  0xaa   :  { %796 = vmatpush1.bf16.msra.mxu1 %v3274_v19  ;;  %v3271_v39 = vld [vmem:[#allocation6 + $0xa8] ss:$16 sps:$4 sm:$0xff]   ;;  %v3304_v40 = vld [vmem:[#allocation6] ss:$16 sps:$4 sm:$0xff]   ;;  %v3279_v41 = vld [vmem:[#allocation6 + $0x8c] ss:$16 sps:$4 sm:$0xff]  }
  0xab   :  { %797 = vmatprep.subr.bf16.mxu1 %v3275_v20  ;;  %v3305_v42 = vld [vmem:[#allocation6 + $0x1e4] ss:$16 sps:$4 sm:$0xff]   ;;  %v3277_v43 = vld [vmem:[#allocation6 + $0x88] ss:$16 sps:$4 sm:$0xff]   ;;  %v3310_v44 = vld [vmem:[#allocation6 + $0x1e0] ss:$16 sps:$4 sm:$0xff]   ;;  %v330_v20 = vlaneseq }
  0xac   :  { %347 = vmatpush1.bf16.msra.mxu0 %v3244_v8  ;;  %v3285_v45 = vld [vmem:[#allocation6 + $0x6c] ss:$16 sps:$4 sm:$0xff]   ;;  %v3311_v46 = vld [vmem:[#allocation6 + $0x1c4] ss:$16 sps:$4 sm:$0xff]   ;;  %v3283_v47 = vld [vmem:[#allocation6 + $0x68] ss:$16 sps:$4 sm:$0xff]  }
  0xad   :  { %348 = vmatprep.subr.bf16.mxu0 %v3245_v10  ;;  %v3316_v48 = vld [vmem:[#allocation6 + $0x1c0] ss:$16 sps:$4 sm:$0xff]   ;;  %v3291_v49 = vld [vmem:[#allocation6 + $0x4c] ss:$16 sps:$4 sm:$0xff]   ;;  %v3317_v50 = vld [vmem:[#allocation6 + $0x1a4] ss:$16 sps:$4 sm:$0xff]  }
  0xae   :  { %798 = vmatpush1.bf16.msra.mxu1 %v3280_v23  ;;  %v3289_v51 = vld [vmem:[#allocation6 + $0x48] ss:$16 sps:$4 sm:$0xff]   ;;  %v3322_v52 = vld [vmem:[#allocation6 + $0x1a0] ss:$16 sps:$4 sm:$0xff]   ;;  %v3297_v53 = vld [vmem:[#allocation6 + $0x2c] ss:$16 sps:$4 sm:$0xff]  }
  0xaf   :  { %799 = vmatprep.subr.bf16.mxu1 %v3281_v24  ;;  %v3295_v54 = vld [vmem:[#allocation6 + $0x28] ss:$16 sps:$4 sm:$0xff]   ;;  %v3303_v55 = vld [vmem:[#allocation6 + $0xc] ss:$16 sps:$4 sm:$0xff]   ;;  %v3323_v63 = vld [vmem:[#allocation6 + $0x184] ss:$16 sps:$4 sm:$0xff]  }
  0xb0   :  { %349 = vmatpush1.bf16.msra.mxu0 %v3247_v13  ;;  %v3301_v56 = vld [vmem:[#allocation6 + $0x8] ss:$16 sps:$4 sm:$0xff]   ;;  %v3309_v57 = vld [vmem:[#allocation6 + $0x1ec] ss:$16 sps:$4 sm:$0xff]   ;;  %v3328_v3 = vld [vmem:[#allocation6 + $0x180] ss:$16 sps:$4 sm:$0xff]  }
  0xb1   :  { %350 = vmatprep.subr.bf16.mxu0 %v3248_v14  ;;  %v3307_v58 = vld [vmem:[#allocation6 + $0x1e8] ss:$16 sps:$4 sm:$0xff]   ;;  %v3315_v59 = vld [vmem:[#allocation6 + $0x1cc] ss:$16 sps:$4 sm:$0xff]   ;;  %v3329_v4 = vld [vmem:[#allocation6 + $0x164] ss:$16 sps:$4 sm:$0xff]  }
  0xb2   :  { %800 = vmatpush1.bf16.msra.mxu1 %v3286_v28  ;;  %v3313_v60 = vld [vmem:[#allocation6 + $0x1c8] ss:$16 sps:$4 sm:$0xff]   ;;  %v3321_v61 = vld [vmem:[#allocation6 + $0x1ac] ss:$16 sps:$4 sm:$0xff]   ;;  %v3334_v7 = vld [vmem:[#allocation6 + $0x160] ss:$16 sps:$4 sm:$0xff]  }
  0xb3   :  { %801 = vmatprep.subr.bf16.mxu1 %v3287_v29  ;;  %v3319_v62 = vld [vmem:[#allocation6 + $0x1a8] ss:$16 sps:$4 sm:$0xff]   ;;  %v3327_v1 = vld [vmem:[#allocation6 + $0x18c] ss:$16 sps:$4 sm:$0xff]   ;;  %v3335_v8 = vld [vmem:[#allocation6 + $0x144] ss:$16 sps:$4 sm:$0xff]  }
  0xb4   :  { %351 = vmatpush1.bf16.msra.mxu0 %v3250_v17  ;;  %v3325_v2 = vld [vmem:[#allocation6 + $0x188] ss:$16 sps:$4 sm:$0xff]   ;;  %v3333_v5 = vld [vmem:[#allocation6 + $0x16c] ss:$16 sps:$4 sm:$0xff]   ;;  %v3340_v11 = vld [vmem:[#allocation6 + $0x140] ss:$16 sps:$4 sm:$0xff]  }
  0xb5   :  { %352 = vmatprep.subr.bf16.mxu0 %v3251_v18  ;;  %v3331_v6 = vld [vmem:[#allocation6 + $0x168] ss:$16 sps:$4 sm:$0xff]   ;;  %v3339_v9 = vld [vmem:[#allocation6 + $0x14c] ss:$16 sps:$4 sm:$0xff]   ;;  %v3341_v12 = vld [vmem:[#allocation6 + $0x124] ss:$16 sps:$4 sm:$0xff]  }
  0xb6   :  { %802 = vmatpush1.bf16.msra.mxu1 %v3292_v33  ;;  %v3337_v10 = vld [vmem:[#allocation6 + $0x148] ss:$16 sps:$4 sm:$0xff]   ;;  %v3345_v13 = vld [vmem:[#allocation6 + $0x12c] ss:$16 sps:$4 sm:$0xff]   ;;  %v3346_v15 = vld [vmem:[#allocation6 + $0x120] ss:$16 sps:$4 sm:$0xff]  }
  0xb7   :  { %803 = vmatprep.subr.bf16.mxu1 %v3293_v34  ;;  %v3343_v14 = vld [vmem:[#allocation6 + $0x128] ss:$16 sps:$4 sm:$0xff]   ;;  %v3347_v16 = vld [vmem:[#allocation6 + $0x104] ss:$16 sps:$4 sm:$0xff]   ;;  %v3351_v17 = vld [vmem:[#allocation6 + $0x10c] ss:$16 sps:$4 sm:$0xff]  }
  0xb8   :  { %353 = vmatpush1.bf16.msra.mxu0 %v3253_v21  ;;  %v3349_v18 = vld [vmem:[#allocation6 + $0x108] ss:$16 sps:$4 sm:$0xff]   ;;  %v3352_v19 = vld [vmem:[#allocation6 + $0x100] ss:$16 sps:$4 sm:$0xff]   ;;  %v4068_v21 = vshrl.u32 %v330_v20, 7  ;;  %s4271_s1 = sld [smem:[#allocation31_spill]] }
  0xb9   :  { %354 = vmatprep.subr.bf16.mxu0 %v3254_v22  ;;  %s4272_s30 = sld [smem:[#allocation33_spill]]  ;;  %vm3887_vm4 = vmmov 0   ;;  %vm2211_vm12 = vcmask 7168  }
  0xba   :  { %804 = vmatpush1.bf16.msra.mxu1 %v3298_v37  ;;  %v4071_v22 = vsub.s32 0, %v4068_v21  ;;  %v4077_v24 = vsub.s32 1, %v4068_v21 }
  0xbb   :  { %805 = vmatprep.subr.bf16.mxu1 %v3299_v38  ;;  %v3353_v38 = vld [vmem:[#allocation7 + $0x78] sm:$0xff]  }
  0xbc   :  { %355 = vmatpush1.bf16.msra.mxu0 %v3256_v25 }
  0xbd   :  { %832 = vmatprep.subr.bf16.mxu0 %v3261_v27 }
  0xbe   :  { %806 = vmatpush1.bf16.msra.mxu1 %v3304_v40  ;;  %v248_v23 = vld [vmem:[%s4271_s1] sm:$0x3]  ;;  %v3355_v40 = vld [vmem:[#allocation7 + $0x38] sm:$0xff]  }
  0xbf   :  { %373 = vmatmul.mubr.bf16.vlgmr.msra.gmra.mxu0 %v4064_v30  ;;  %807 = vmatprep.subr.bf16.mxu1 %v3305_v42  ;;  %v333_v25 = vrot.slane %v248_v23, %v4071_v22  ;;  %v337_v26 = vrot.slane %v248_v23, %v4077_v24  ;;  %v3357_v42 = vld [vmem:[#allocation7 + $0x70] sm:$0xff]  }
  0xc0   :  { %833 = vmatpush1.bf16.msra.mxu0 %v3259_v31 }
  0xc1   :  { %834 = vmatprep.subr.bf16.mxu0 %v3267_v32 }
  0xc2   :  { %808 = vmatpush2.bf16.msra.mxu1 %v3310_v44  ;;  %v3359_v44 = vld [vmem:[#allocation7 + $0x30] sm:$0xff]  }
  0xc3   :  { %809 = vmatprep.subr.bf16.mxu1 %v3311_v46  ;;  %v3361_v46 = vld [vmem:[#allocation7 + $0x68] sm:$0xff]  }
  0xc4   :  { %835 = vmatpush1.bf16.msra.mxu0 %v3265_v35 }
  0xc5   :  { %836 = vmatprep.subr.bf16.mxu0 %v3273_v36 }
  0xc6   :  { %810 = vmatpush2.bf16.msra.mxu1 %v3316_v48  ;;  %v3363_v48 = vld [vmem:[#allocation7 + $0x28] sm:$0xff]  }
  0xc7   :  { %811 = vmatprep.subr.bf16.mxu1 %v3317_v50  ;;  %v3365_v50 = vld [vmem:[#allocation7 + $0x60] sm:$0xff]  }
  0xc8   :  { %837 = vmatpush1.bf16.msra.mxu0 %v3271_v39  ;;  %v3354_v39 = vld [vmem:[#allocation7 + $0xf8] sm:$0xff]  }
  0xc9   :  { %838 = vmatprep.subr.bf16.mxu0 %v3279_v41  ;;  %v3356_v41 = vld [vmem:[#allocation7 + $0xb8] sm:$0xff]  }
  0xca   :  { %812 = vmatpush2.bf16.msra.mxu1 %v3322_v52  ;;  %v3367_v52 = vld [vmem:[#allocation7 + $0x20] sm:$0xff]  }
  0xcb   :  { %813 = vmatprep.subr.bf16.mxu1 %v3323_v63  ;;  %v3378_v63 = vld [vmem:[#allocation7 + $0xc8] sm:$0xff]  }
  0xcc   :  { %839 = vmatpush1.bf16.msra.mxu0 %v3277_v43  ;;  %v3358_v43 = vld [vmem:[#allocation7 + $0xf0] sm:$0xff]  }
  0xcd   :  { %840 = vmatprep.subr.bf16.mxu0 %v3285_v45  ;;  %v3360_v45 = vld [vmem:[#allocation7 + $0xb0] sm:$0xff]  }
  0xce   :  { %814 = vmatpush2.bf16.msra.mxu1 %v3328_v3  ;;  %v3381_v3 = vld [vmem:[#allocation7 + $0x40] sm:$0xff]  }
  0xcf   :  { %815 = vmatprep.subr.bf16.mxu1 %v3329_v4  ;;  %v3382_v4 = vld [vmem:[#allocation7 + $0xc0] sm:$0xff]  }
  0xd0   :  { %841 = vmatpush1.bf16.msra.mxu0 %v3283_v47  ;;  %v3362_v47 = vld [vmem:[#allocation7 + $0xe8] sm:$0xff]  }
  0xd1   :  { %842 = vmatprep.subr.bf16.mxu0 %v3291_v49  ;;  %v3364_v49 = vld [vmem:[#allocation7 + $0xa8] sm:$0xff]  }
  0xd2   :  { %816 = vmatpush2.bf16.msra.mxu1 %v3334_v7  ;;  %v3387_v7 = vld [vmem:[#allocation10 + $0xac] ss:$12 sps:$4 sm:$0xff]  }
  0xd3   :  { %817 = vmatprep.subr.bf16.mxu1 %v3335_v8  ;;  %v3886_v8 = vmov 0.0  }
  0xd4   :  { %843 = vmatpush1.bf16.msra.mxu0 %v3289_v51  ;;  %v3366_v51 = vld [vmem:[#allocation7 + $0xe0] sm:$0xff]  }
  0xd5   :  { %844 = vmatprep.subr.bf16.mxu0 %v3297_v53  ;;  %v3368_v53 = vld [vmem:[#allocation7 + $0xa0] sm:$0xff]  }
  0xd6   :  { %818 = vmatpush2.bf16.msra.mxu1 %v3340_v11  ;;  %v785_v11 = vsub.s32 3, %v4068_v21 }
  0xd7   :  { %819 = vmatprep.subr.bf16.mxu1 %v3341_v12 }
  0xd8   :  { %845 = vmatpush1.bf16.msra.mxu0 %v3295_v54  ;;  %v3369_v54 = vld [vmem:[#allocation7 + $0x58] sm:$0xff]  }
  0xd9   :  { %846 = vmatprep.subr.bf16.mxu0 %v3303_v55  ;;  %v3370_v55 = vld [vmem:[#allocation7 + $0xd8] sm:$0xff]  }
  0xda   :  { %820 = vmatpush2.bf16.msra.mxu1 %v3346_v15 }
  0xdb   :  { %821 = vmatprep.subr.bf16.mxu1 %v3347_v16 }
  0xdc   :  { %847 = vmatpush1.bf16.msra.mxu0 %v3301_v56  ;;  %v3371_v56 = vld [vmem:[#allocation7 + $0x18] sm:$0xff]  }
  0xdd   :  { %848 = vmatprep.subr.bf16.mxu0 %v3309_v57  ;;  %v3372_v57 = vld [vmem:[#allocation7 + $0x98] sm:$0xff]  }
  0xde   :  { %822 = vmatpush2.bf16.msra.mxu1 %v3352_v19 }
  0xdf   :  { %2995 = vmatprep.subr.bf16.mxu1 %v3353_v38 }
  0xe0   :  { %849 = vmatpush2.bf16.msra.mxu0 %v3307_v58  ;;  %v3373_v58 = vld [vmem:[#allocation7 + $0x50] sm:$0xff]  }
  0xe1   :  { %850 = vmatprep.subr.bf16.mxu0 %v3315_v59  ;;  %v3374_v59 = vld [vmem:[#allocation7 + $0xd0] sm:$0xff]  }
  0xe4   :  { %851 = vmatpush2.bf16.msra.mxu0 %v3313_v60  ;;  %v3375_v60 = vld [vmem:[#allocation7 + $0x10] sm:$0xff]  }
  0xe5   :  { %852 = vmatprep.subr.bf16.mxu0 %v3321_v61  ;;  %v3376_v61 = vld [vmem:[#allocation7 + $0x90] sm:$0xff]  }
  0xe8   :  { %853 = vmatpush2.bf16.msra.mxu0 %v3319_v62  ;;  %v3377_v62 = vld [vmem:[#allocation7 + $0x48] sm:$0xff]  }
  0xe9   :  { %854 = vmatprep.subr.bf16.mxu0 %v3327_v1  ;;  %v3379_v1 = vld [vmem:[#allocation7 + $0x8] sm:$0xff]  }
  0xec   :  { %855 = vmatpush2.bf16.msra.mxu0 %v3325_v2  ;;  %v3380_v2 = vld [vmem:[#allocation7 + $0x88] sm:$0xff]  }
  0xed   :  { %856 = vmatprep.subr.bf16.mxu0 %v3333_v5  ;;  %v3383_v5 = vld [vmem:[#allocation7] sm:$0xff]  }
  0xf0   :  { %857 = vmatpush2.bf16.msra.mxu0 %v3331_v6  ;;  %v3384_v6 = vld [vmem:[#allocation7 + $0x80] sm:$0xff]  }
  0xf1   :  { %858 = vmatprep.subr.bf16.mxu0 %v3339_v9  ;;  %v781_v9 = vsub.s32 2, %v4068_v21 }
  0xf4   :  { %859 = vmatpush2.bf16.msra.mxu0 %v3337_v10  ;;  %v449_v10 = vld [vmem:[%s4272_s30] sm:$0xf] }
  0xf5   :  { %860 = vmatprep.subr.bf16.mxu0 %v3345_v13  ;;  %v774_v12 = vrot.slane %v449_v10, %v4071_v22  ;;  %v782_v13 = vrot.slane %v449_v10, %v781_v9  ;;  %v778_v16 = vrot.slane %v449_v10, %v4077_v24 }
  0xf8   :  { %861 = vmatpush2.bf16.msra.mxu0 %v3343_v14 }
  0xf9   :  { %862 = vmatprep.subr.bf16.mxu0 %v3351_v17  ;;  %v786_v17 = vrot.slane %v449_v10, %v785_v11 }
  0xfc   :  { %863 = vmatpush2.bf16.msra.mxu0 %v3349_v18 }
  0xfd   :  { %3017 = vmatprep.subr.bf16.mxu0 %v3354_v39 }
 0x17f   :  { %v374_v27 = vpop.f32.mrf.mxu0 }
 0x180   :  { %v375_v28 = vadd.f32 %v374_v27, %v333_v25 }
 0x181   :  { %v376_v29 = vpop.f32.mrf.mxu0 }
 0x182   :  { %v377_v31 = vadd.f32 %v376_v29, %v337_v26  ;;  %3537 = vtanh.f32 %v375_v28 }
 0x183   :  { %v378_v32 = vpop.f32.mrf.mxu0 }
 0x184   :  { %3539 = vtanh.f32 %v377_v31 }
 0x185   :  { %v379_v33 = vpop.f32.mrf.mxu0 }
 0x18f   :  { %v3538_v34 = vpop.eup %3537 }
 0x190   :  { %v383_v37 = vpack.c.bf16 %v3538_v34, %v3538_v34 }
 0x191   :  { %v3540_v35 = vpop.eup %3539 }
 0x192   :  { %v384_v36 = vpack.c.bf16 %v3540_v35, %v3540_v35 }
 0x194   :  { %823 = vmatprep.mubr.bf16.mxu1 %v384_v36  ;;  %864 = vmatprep.mubr.bf16.mxu0 %v384_v36 }
 0x195   :  { %824 = vmatmul.mubr.bf16.vlgmr.msra.gmra.mxu1 %v383_v37  ;;  %865 = vmatmul.mubr.bf16.vlgmr.msra.gmra.mxu0 %v383_v37 }
 0x196   :  { %2996 = vmatpush3.bf16.msra.mxu1 %v3355_v40  ;;  %3018 = vmatpush3.bf16.msra.mxu0 %v3356_v41 }
 0x197   :  { %2997 = vmatprep.subr.bf16.mxu1 %v3357_v42  ;;  %3019 = vmatprep.subr.bf16.mxu0 %v3358_v43 }
 0x19a   :  { %2998 = vmatpush3.bf16.msra.mxu1 %v3359_v44  ;;  %3020 = vmatpush3.bf16.msra.mxu0 %v3360_v45 }
 0x19b   :  { %2999 = vmatprep.subr.bf16.mxu1 %v3361_v46  ;;  %3021 = vmatprep.subr.bf16.mxu0 %v3362_v47 }
 0x19e   :  { %3000 = vmatpush3.bf16.msra.mxu1 %v3363_v48  ;;  %3022 = vmatpush3.bf16.msra.mxu0 %v3364_v49 }
 0x19f   :  { %3001 = vmatprep.subr.bf16.mxu1 %v3365_v50  ;;  %3023 = vmatprep.subr.bf16.mxu0 %v3366_v51 }
 0x1a2   :  { %3002 = vmatpush3.bf16.msra.mxu1 %v3367_v52  ;;  %3024 = vmatpush3.bf16.msra.mxu0 %v3368_v53 }
 0x1a3   :  { %3003 = vmatprep.subr.bf16.mxu1 %v3369_v54  ;;  %3025 = vmatprep.subr.bf16.mxu0 %v3370_v55 }
 0x1a6   :  { %3004 = vmatpush3.bf16.msra.mxu1 %v3371_v56  ;;  %3026 = vmatpush3.bf16.msra.mxu0 %v3372_v57 }
 0x1a7   :  { %3005 = vmatprep.subr.bf16.mxu1 %v3373_v58  ;;  %3027 = vmatprep.subr.bf16.mxu0 %v3374_v59 }
 0x1aa   :  { %3006 = vmatpush3.bf16.msra.mxu1 %v3375_v60  ;;  %3028 = vmatpush3.bf16.msra.mxu0 %v3376_v61 }
 0x1ab   :  { %3007 = vmatprep.subr.bf16.mxu1 %v3377_v62  ;;  %3029 = vmatprep.subr.bf16.mxu0 %v3378_v63 }
 0x1ae   :  { %3008 = vmatpush3.bf16.msra.mxu1 %v3379_v1  ;;  %3030 = vmatpush3.bf16.msra.mxu0 %v3380_v2 }
 0x1af   :  { %3009 = vmatprep.subr.bf16.mxu1 %v3381_v3  ;;  %3031 = vmatprep.subr.bf16.mxu0 %v3382_v4 }
 0x1b2   :  { %3010 = vmatpush3.bf16.msra.mxu1 %v3383_v5  ;;  %3032 = vmatpush3.bf16.msra.mxu0 %v3384_v6 }
 0x1b3   :  { %3106 = vmatprep.subr.bf16.mxu0 %v3886_v8  ;;  %1436 = vmatprep.subr.bf16.mxu1 %v3387_v7 }
 0x255   :  { %v825_v14 = vpop.f32.mrf.mxu1  ;;  %v866_v15 = vpop.f32.mrf.mxu0 }
 0x256   :  { %v4089_v18 = vadd.f32 %v825_v14, %v774_v12  ;;  %v4091_v19 = vadd.f32 %v866_v15, %v782_v13 }
 0x257   :  { %v827_v23 = vpop.f32.mrf.mxu1  ;;  %v868_v25 = vpop.f32.mrf.mxu0 }
 0x258   :  { %v877_v26 = vand.u32 2147483647, %v4089_v18  ;;  %v879_v27 = vand.u32 2147483647, %v4091_v19  ;;  %v4095_v28 = vadd.f32 %v827_v23, %v778_v16  ;;  %v4097_v29 = vadd.f32 %v868_v25, %v786_v17 }
 0x259   :  { %v829_v31 = vpop.f32.mrf.mxu1  ;;  %v870_v32 = vpop.f32.mrf.mxu0  ;;  %v873_v11 = vmax.f32 %v4089_v18, 0.0  ;;  %v875_v14 = vmax.f32 %v4091_v19, 0.0 }
 0x25a   :  { %v881_v33 = vsub.f32 0.0, %v877_v26  ;;  %v883_v34 = vsub.f32 0.0, %v879_v27  ;;  %v878_v35 = vand.u32 2147483647, %v4095_v28  ;;  %v880_v36 = vand.u32 2147483647, %v4097_v29 }
 0x25b   :  { %v830_v37 = vpop.f32.mrf.mxu1  ;;  %v871_v38 = vpop.f32.mrf.mxu0  ;;  %v874_v23 = vmax.f32 %v4095_v28, 0.0  ;;  %v876_v31 = vmax.f32 %v4097_v29, 0.0  ;;  %v3389_v28 = vld [vmem:[#allocation10 + $0x90] ss:$12 sps:$4 sm:$0xff]   ;;  %v3392_v29 = vld [vmem:[#allocation10 + $0x98] ss:$12 sps:$4 sm:$0xff]  }
 0x25c   :  { %v885_v39 = vmul.f32 1.442695, %v881_v33  ;;  %v889_v40 = vmul.f32 1.442695, %v883_v34  ;;  %v882_v41 = vsub.f32 0.0, %v878_v35  ;;  %v884_v42 = vsub.f32 0.0, %v880_v36 }
 0x25d   :  { %v3385_v37 = vld [vmem:[#allocation10 + $0xa8] ss:$12 sps:$4 sm:$0xff]  }
 0x25e   :  { %3541 = vpow2.f32 %v885_v39  ;;  %v887_v43 = vmul.f32 1.442695, %v882_v41  ;;  %v891_v44 = vmul.f32 1.442695, %v884_v42  ;;  %v3388_v39 = vld [vmem:[#allocation10 + $0xb0] ss:$12 sps:$4 sm:$0xff]  }
 0x25f   :  { %3543 = vpow2.f32 %v889_v40  ;;  %v3391_v40 = vld [vmem:[#allocation10 + $0x94] ss:$12 sps:$4 sm:$0xff]   ;;  %v3393_v42 = vld [vmem:[#allocation10 + $0x78] ss:$12 sps:$4 sm:$0xff]  }
 0x260   :  { %3545 = vpow2.f32 %v887_v43  ;;  %v3395_v43 = vld [vmem:[#allocation10 + $0x7c] ss:$12 sps:$4 sm:$0xff]  }
 0x261   :  { %3547 = vpow2.f32 %v891_v44  ;;  %v3396_v44 = vld [vmem:[#allocation10 + $0x80] ss:$12 sps:$4 sm:$0xff]  }
 0x26b   :  { %v3542_v45 = vpop.eup %3541 }
 0x26c   :  { %v3544_v46 = vpop.eup %3543  ;;  %v893_v47 = vadd.f32 1.0, %v3542_v45  ;;  %v896_v53 = vmul.f32 -0.5, %v3542_v45  ;;  %v899_v58 = vand.u32 2147483647, %v3542_v45 }
 0x26d   :  { %v911_v48 = vadd.f32 1.0, %v3544_v46  ;;  %v3546_v49 = vpop.eup %3545  ;;  %v914_v54 = vmul.f32 -0.5, %v3544_v46  ;;  %v917_v60 = vand.u32 2147483647, %v3544_v46 }
 0x26e   :  { %3549 = vlog2.f32 %v893_v47  ;;  %v3548_v50 = vpop.eup %3547  ;;  %v902_v51 = vadd.f32 1.0, %v3546_v49  ;;  %v905_v55 = vmul.f32 -0.5, %v3546_v49  ;;  %v897_v56 = vadd.f32 1.0, %v896_v53  ;;  %v3400_v47 = vld [vmem:[#allocation10 + $0x68] ss:$12 sps:$4 sm:$0xff]  }
 0x26f   :  { %3551 = vlog2.f32 %v911_v48  ;;  %v920_v52 = vadd.f32 1.0, %v3548_v50  ;;  %v923_v57 = vmul.f32 -0.5, %v3548_v50  ;;  %v915_v59 = vadd.f32 1.0, %v914_v54  ;;  %v3401_v48 = vld [vmem:[#allocation10 + $0x48] ss:$12 sps:$4 sm:$0xff]  }
 0x270   :  { %3553 = vlog2.f32 %v902_v51  ;;  %v906_v62 = vadd.f32 1.0, %v905_v55  ;;  %v898_v2 = vmul.f32 %v3542_v45, %v897_v56  ;;  %v908_v3 = vand.u32 2147483647, %v3546_v49  ;;  %v3399_v45 = vld [vmem:[#allocation10 + $0x64] ss:$12 sps:$4 sm:$0xff]  }
 0x271   :  { %3555 = vlog2.f32 %v920_v52  ;;  %v924_v4 = vadd.f32 1.0, %v923_v57  ;;  %vm4101_vm0 = vcmp.lt.f32.partialorder %v899_v58, 0.0004427343  ;;  %v916_v7 = vmul.f32 %v3544_v46, %v915_v59  ;;  %v3397_v46 = vld [vmem:[#allocation10 + $0x60] ss:$12 sps:$4 sm:$0xff]  }
 0x272   :  { %v926_v9 = vand.u32 2147483647, %v3548_v50  ;;  %vm918_vm1 = vcmp.lt.f32.partialorder %v917_v60, 0.0004427343  ;;  %v907_v17 = vmul.f32 %v3546_v49, %v906_v62  ;;  %vm909_vm2 = vcmp.lt.f32.partialorder %v908_v3, 0.0004427343 }
 0x273   :  { %v925_v26 = vmul.f32 %v3548_v50, %v924_v4  ;;  %v3403_v49 = vld [vmem:[#allocation10 + $0x4c] ss:$12 sps:$4 sm:$0xff]   ;;  %v3404_v50 = vld [vmem:[#allocation10 + $0x50] ss:$12 sps:$4 sm:$0xff]   ;;  %v3407_v51 = vld [vmem:[#allocation10 + $0x34] ss:$12 sps:$4 sm:$0xff]  }
 0x274   :  { %vm927_vm3 = vcmp.lt.f32.partialorder %v926_v9, 0.0004427343  ;;  %v3405_v52 = vld [vmem:[#allocation10 + $0x30] ss:$12 sps:$4 sm:$0xff]   ;;  %v3408_v53 = vld [vmem:[#allocation10 + $0x38] ss:$12 sps:$4 sm:$0xff]  }
 0x275   :  { %v3411_v54 = vld [vmem:[#allocation10 + $0x1c] ss:$12 sps:$4 sm:$0xff]   ;;  %v3409_v55 = vld [vmem:[#allocation10 + $0x18] ss:$12 sps:$4 sm:$0xff]   ;;  %v3412_v56 = vld [vmem:[#allocation10 + $0x20] ss:$12 sps:$4 sm:$0xff]  }
 0x276   :  { %v3415_v57 = vld [vmem:[#allocation10 + $0x4] ss:$12 sps:$4 sm:$0xff]   ;;  %v3413_v58 = vld [vmem:[#allocation10] ss:$12 sps:$4 sm:$0xff]   ;;  %v3416_v59 = vld [vmem:[#allocation10 + $0x8] ss:$12 sps:$4 sm:$0xff]  }
 0x277   :  { %v3419_v60 = vld [vmem:[#allocation12 + $0x74] ss:$8 sps:$4 sm:$0xff]  }
 0x27b   :  { %v3550_v61 = vpop.eup %3549 }
 0x27c   :  { %v3552_v63 = vpop.eup %3551  ;;  %v895_v1 = vmul.f32 0.6931472, %v3550_v61  ;;  %v3443_v61 = vld [vmem:[#allocation12 + $0x174] ss:$8 sps:$4 sm:$0xff]  }
 0x27d   :  { %v913_v6 = vmul.f32 0.6931472, %v3552_v63  ;;  %v3554_v10 = vpop.eup %3553 }
 0x27e   :  { %v901_v12 = vsel %vm4101_vm0, %v898_v2, %v895_v1  ;;  %v3556_v13 = vpop.eup %3555  ;;  %v904_v16 = vmul.f32 0.6931472, %v3554_v10  ;;  %v1001_v1 = vld [vmem:[#allocation9] sm:$0x1] }
 0x27f   :  { %v919_v15 = vsel %vm918_vm1, %v916_v7, %v913_v6  ;;  %v922_v25 = vmul.f32 0.6931472, %v3556_v13  ;;  %v929_v27 = vadd.f32 %v901_v12, %v873_v11 }
 0x280   :  { %v910_v32 = vsel %vm909_vm2, %v907_v17, %v904_v16  ;;  %v931_v18 = vadd.f32 %v919_v15, %v875_v14  ;;  %v3417_v14 = vld [vmem:[#allocation12 + $0x70] ss:$8 sps:$4 sm:$0xff]   ;;  %v3422_v17 = vld [vmem:[#allocation12 + $0x64] ss:$8 sps:$4 sm:$0xff]  }
 0x281   :  { %v930_v33 = vadd.f32 %v910_v32, %v874_v23  ;;  %v928_v34 = vsel %vm927_vm3, %v925_v26, %v922_v25  ;;  %v933_v19 = vpack.c.bf16 %v929_v27, %v929_v27  ;;  %v3441_v15 = vld [vmem:[#allocation12 + $0x170] ss:$8 sps:$4 sm:$0xff]   ;;  %v3449_v23 = vld [vmem:[#allocation12 + $0x164] ss:$8 sps:$4 sm:$0xff]   ;;  %v3420_v25 = vld [vmem:[#allocation12 + $0x60] ss:$8 sps:$4 sm:$0xff]  }
 0x282   :  { %v932_v35 = vadd.f32 %v928_v34, %v876_v31  ;;  %v935_v41 = vpack.c.bf16 %v931_v18, %v931_v18  ;;  %v3447_v26 = vld [vmem:[#allocation12 + $0x160] ss:$8 sps:$4 sm:$0xff]   ;;  %v3425_v27 = vld [vmem:[#allocation12 + $0x54] ss:$8 sps:$4 sm:$0xff]   ;;  %v3423_v32 = vld [vmem:[#allocation12 + $0x50] ss:$8 sps:$4 sm:$0xff]  }
 0x283   :  { %v934_v36 = vpack.c.bf16 %v930_v33, %v930_v33  ;;  %v3455_v31 = vld [vmem:[#allocation12 + $0x154] ss:$8 sps:$4 sm:$0xff]   ;;  %v3453_v18 = vld [vmem:[#allocation12 + $0x150] ss:$8 sps:$4 sm:$0xff]   ;;  %v3428_v33 = vld [vmem:[#allocation12 + $0x44] ss:$8 sps:$4 sm:$0xff]  }
 0x284   :  { %v936_v38 = vpack.c.bf16 %v932_v35, %v932_v35  ;;  %v3426_v34 = vld [vmem:[#allocation12 + $0x40] ss:$8 sps:$4 sm:$0xff]   ;;  %v3431_v35 = vld [vmem:[#allocation12 + $0x34] ss:$8 sps:$4 sm:$0xff]  }
 0x285   :  { %1226 = vmatprep.mubr.bf16.mxu1 %v934_v36  ;;  %v3429_v36 = vld [vmem:[#allocation12 + $0x30] ss:$8 sps:$4 sm:$0xff]  }
 0x286   :  { %1266 = vmatprep.mubr.bf16.mxu0 %v936_v38  ;;  %1227 = vmatmul.mubr.bf16.vlgmr.msra.gmra.mxu1 %v933_v19  ;;  %v3432_v19 = vld [vmem:[#allocation12 + $0x20] ss:$8 sps:$4 sm:$0xff]   ;;  %v3435_v38 = vld [vmem:[#allocation12 + $0x10] ss:$8 sps:$4 sm:$0xff]  }
 0x287   :  { %1267 = vmatmul.mubr.bf16.vlgmr.msra.gmra.mxu0 %v935_v41  ;;  %1437 = vmatpush1.bf16.msra.mxu1 %v3385_v37  ;;  %v3434_v37 = vld [vmem:[#allocation12 + $0x24] ss:$8 sps:$4 sm:$0xff]   ;;  %v3446_v41 = vld [vmem:[#allocation12 + $0xf4] ss:$8 sps:$4 sm:$0xff]  }
 0x288   :  { %3107 = vmatpush3.bf16.msra.mxu0 %v3388_v39  ;;  %1438 = vmatprep.subr.bf16.mxu1 %v3391_v40  ;;  %v3440_v39 = vld [vmem:[#allocation12 + $0x4] ss:$8 sps:$4 sm:$0xff]   ;;  %v3438_v40 = vld [vmem:[#allocation12] ss:$8 sps:$4 sm:$0xff]  }
 0x289   :  { %3108 = vmatprep.subr.bf16.mxu0 %v3886_v8  ;;  %1468 = vmatprep.mubr.bf16.mxu1 %v3885_v0 }
 0x28a   :  { %3122 = vmatprep.mubr.msk.bf16.mxu0 %vm3887_vm4, %v3886_v8 }
 0x28b   :  { %1439 = vmatpush1.bf16.msra.mxu1 %v3389_v28  ;;  %v3444_v28 = vld [vmem:[#allocation12 + $0xf0] ss:$8 sps:$4 sm:$0xff]  }
 0x28c   :  { %3109 = vmatpush3.bf16.msra.mxu0 %v3392_v29  ;;  %1440 = vmatprep.subr.bf16.mxu1 %v3395_v43  ;;  %v3452_v29 = vld [vmem:[#allocation12 + $0xe4] ss:$8 sps:$4 sm:$0xff]   ;;  %v3458_v43 = vld [vmem:[#allocation12 + $0xd4] ss:$8 sps:$4 sm:$0xff]  }
 0x28d   :  { %3110 = vmatprep.subr.bf16.mxu0 %v3886_v8 }
 0x28f   :  { %1441 = vmatpush1.bf16.msra.mxu1 %v3393_v42  ;;  %v3450_v42 = vld [vmem:[#allocation12 + $0xe0] ss:$8 sps:$4 sm:$0xff]  }
 0x290   :  { %3111 = vmatpush3.bf16.msra.mxu0 %v3396_v44  ;;  %1442 = vmatprep.subr.bf16.mxu1 %v3399_v45  ;;  %v3456_v44 = vld [vmem:[#allocation12 + $0xd0] ss:$8 sps:$4 sm:$0xff]   ;;  %v3461_v45 = vld [vmem:[#allocation12 + $0x144] ss:$8 sps:$4 sm:$0xff]  }
 0x291   :  { %3112 = vmatprep.subr.bf16.mxu0 %v3886_v8 }
 0x293   :  { %1443 = vmatpush1.bf16.msra.mxu1 %v3397_v46  ;;  %v3459_v46 = vld [vmem:[#allocation12 + $0x140] ss:$8 sps:$4 sm:$0xff]  }
 0x294   :  { %3113 = vmatpush3.bf16.msra.mxu0 %v3400_v47  ;;  %1444 = vmatprep.subr.bf16.mxu1 %v3403_v49  ;;  %v3464_v47 = vld [vmem:[#allocation12 + $0xc4] ss:$8 sps:$4 sm:$0xff]   ;;  %v3467_v49 = vld [vmem:[#allocation12 + $0x134] ss:$8 sps:$4 sm:$0xff]  }
 0x295   :  { %3114 = vmatprep.subr.bf16.mxu0 %v3886_v8 }
 0x297   :  { %1445 = vmatpush1.bf16.msra.mxu1 %v3401_v48  ;;  %v3462_v48 = vld [vmem:[#allocation12 + $0xc0] ss:$8 sps:$4 sm:$0xff]  }
 0x298   :  { %3115 = vmatpush3.bf16.msra.mxu0 %v3404_v50  ;;  %1446 = vmatprep.subr.bf16.mxu1 %v3407_v51  ;;  %v3465_v50 = vld [vmem:[#allocation12 + $0x130] ss:$8 sps:$4 sm:$0xff]   ;;  %v3470_v51 = vld [vmem:[#allocation12 + $0xb4] ss:$8 sps:$4 sm:$0xff]  }
 0x299   :  { %3116 = vmatprep.subr.bf16.mxu0 %v3886_v8 }
 0x29b   :  { %1447 = vmatpush1.bf16.msra.mxu1 %v3405_v52  ;;  %v3468_v52 = vld [vmem:[#allocation12 + $0xb0] ss:$8 sps:$4 sm:$0xff]  }
 0x29c   :  { %3117 = vmatpush3.bf16.msra.mxu0 %v3408_v53  ;;  %1448 = vmatprep.subr.bf16.mxu1 %v3411_v54  ;;  %v3471_v53 = vld [vmem:[#allocation12 + $0x120] ss:$8 sps:$4 sm:$0xff]   ;;  %v3473_v54 = vld [vmem:[#allocation12 + $0x124] ss:$8 sps:$4 sm:$0xff]  }
 0x29d   :  { %3118 = vmatprep.subr.bf16.mxu0 %v3886_v8 }
 0x29f   :  { %1449 = vmatpush1.bf16.msra.mxu1 %v3409_v55  ;;  %v3474_v55 = vld [vmem:[#allocation12 + $0xa0] ss:$8 sps:$4 sm:$0xff]  }
 0x2a0   :  { %3119 = vmatpush3.bf16.msra.mxu0 %v3412_v56  ;;  %1450 = vmatprep.subr.bf16.mxu1 %v3415_v57  ;;  %v3476_v56 = vld [vmem:[#allocation12 + $0xa4] ss:$8 sps:$4 sm:$0xff]   ;;  %v3479_v57 = vld [vmem:[#allocation12 + $0x114] ss:$8 sps:$4 sm:$0xff]  }
 0x2a1   :  { %3120 = vmatprep.subr.bf16.mxu0 %v3886_v8 }
 0x2a3   :  { %1451 = vmatpush1.bf16.msra.mxu1 %v3413_v58  ;;  %v3482_v58 = vld [vmem:[#allocation12 + $0x94] ss:$8 sps:$4 sm:$0xff]  }
 0x2a4   :  { %3121 = vmatpush3.bf16.msra.mxu0 %v3416_v59  ;;  %1850 = vmatprep.subr.bf16.mxu1 %v3419_v60  ;;  %v3477_v59 = vld [vmem:[#allocation12 + $0x110] ss:$8 sps:$4 sm:$0xff]   ;;  %v3485_v60 = vld [vmem:[#allocation12 + $0x104] ss:$8 sps:$4 sm:$0xff]  }
 0x2a5   :  { %1893 = vmatprep.subr.bf16.mxu0 %v3443_v61  ;;  %v3480_v61 = vld [vmem:[#allocation12 + $0x90] ss:$8 sps:$4 sm:$0xff]  }
 0x346   :  { %v3011_v62 = vpop.f32.mrf.mxu1 }
 0x347   :  { %v3033_v63 = vpop.f32.mrf.mxu0 }
 0x348   :  { %v3012_v2 = vpop.f32.mrf.mxu1 }
 0x349   :  { %v3013_v3 = vadd.f32 %v3012_v2, %v3011_v62  ;;  %v3034_v4 = vpop.f32.mrf.mxu0  ;;  %v3488_v62 = vld [vmem:[#allocation12 + $0x84] ss:$8 sps:$4 sm:$0xff]  }
 0x34a   :  { %v3014_v5 = vpop.f32.mrf.mxu1  ;;  %v3035_v7 = vadd.f32 %v3034_v4, %v3033_v63  ;;  %v3483_v63 = vld [vmem:[#allocation12 + $0x100] ss:$8 sps:$4 sm:$0xff]  }
 0x34b   :  { %v1229_v6 = vadd.f32 %v3013_v3, %v1001_v1  ;;  %v3036_v9 = vpop.f32.mrf.mxu0  ;;  %v3486_v1 = vld [vmem:[#allocation12 + $0x80] ss:$8 sps:$4 sm:$0xff]   ;;  %v1517_v3 = vld [vmem:[#allocation2] sm:$0xff] }
 0x34c   :  { %v3015_v10 = vpop.f32.mrf.mxu1  ;;  %v1520_v4 = vld [vmem:[#allocation2 + $0x18] sm:$0xff]  ;;  %v1522_v9 = vld [vmem:[#allocation2 + $0x28] sm:$0xff] }
 0x34d   :  { %v1269_v11 = vadd.f32 %v3035_v7, %v1229_v6  ;;  %v3037_v12 = vpop.f32.mrf.mxu0  ;;  %v1519_v6 = vld [vmem:[#allocation2 + $0x10] sm:$0xff] }
 0x34f   :  { %3557 = vtanh.f32 %v1269_v11 }
 0x35c   :  { %v4121_v13 = vpop.eup %3557 }
 0x35d   :  { %v1275_v16 = vpack.c.bf16 %v4121_v13, %v4121_v13 }
 0x35f   :  { %1469 = vmatmul.mubr.bf16.vlgmr.msra.gmra.mxu1 %v1275_v16  ;;  %3123 = vmatmul.mubr.bf16.vlgmr.msra.gmra.mxu0 %v1275_v16 }
 0x360   :  { %1851 = vmatpush1.bf16.msra.mxu1 %v3417_v14  ;;  %1894 = vmatpush1.bf16.msra.mxu0 %v3441_v15 }
 0x361   :  { %1852 = vmatprep.subr.bf16.mxu1 %v3422_v17  ;;  %1895 = vmatprep.subr.bf16.mxu0 %v3449_v23  ;;  %v1518_v17 = vld [vmem:[#allocation2 + $0x8] sm:$0xff]  ;;  %v1521_v23 = vld [vmem:[#allocation2 + $0x20] sm:$0xff] }
 0x362   :  { %1925 = vmatprep.mubr.bf16.mxu0 %v3885_v0  ;;  %v3437_v0 = vld [vmem:[#allocation12 + $0x14] ss:$8 sps:$4 sm:$0xff]  }
 0x364   :  { %1853 = vmatpush1.bf16.msra.mxu1 %v3420_v25  ;;  %1896 = vmatpush1.bf16.msra.mxu0 %v3447_v26 }
 0x365   :  { %1854 = vmatprep.subr.bf16.mxu1 %v3425_v27  ;;  %1897 = vmatprep.subr.bf16.mxu0 %v3455_v31 }
 0x368   :  { %1855 = vmatpush1.bf16.msra.mxu1 %v3423_v32  ;;  %1898 = vmatpush1.bf16.msra.mxu0 %v3453_v18 }
 0x369   :  { %1856 = vmatprep.subr.bf16.mxu1 %v3428_v33  ;;  %1899 = vmatprep.subr.bf16.mxu0 %v3461_v45  ;;  %v3494_v45 = vld [vmem:[#allocation15 + $0x10] sm:$0xff]  }
 0x36c   :  { %1857 = vmatpush1.bf16.msra.mxu1 %v3426_v34  ;;  %1900 = vmatpush1.bf16.msra.mxu0 %v3459_v46  ;;  %v3495_v46 = vld [vmem:[#allocation15 + $0x8] sm:$0xff]  }
 0x36d   :  { %1858 = vmatprep.subr.bf16.mxu1 %v3431_v35  ;;  %1901 = vmatprep.subr.bf16.mxu0 %v3467_v49  ;;  %v3498_v49 = vld [vmem:[#allocation13 + $0x38] sm:$0xff]  }
 0x370   :  { %1859 = vmatpush1.bf16.msra.mxu1 %v3429_v36  ;;  %1902 = vmatpush1.bf16.msra.mxu0 %v3465_v50  ;;  %v3499_v50 = vld [vmem:[#allocation13 + $0x70] sm:$0xff]  }
 0x371   :  { %1860 = vmatprep.subr.bf16.mxu1 %v3434_v37  ;;  %1903 = vmatprep.subr.bf16.mxu0 %v3473_v54  ;;  %v3503_v54 = vld [vmem:[#allocation13 + $0x60] sm:$0xff]  }
 0x374   :  { %1861 = vmatpush1.bf16.msra.mxu1 %v3432_v19  ;;  %1904 = vmatpush1.bf16.msra.mxu0 %v3471_v53  ;;  %v3502_v53 = vld [vmem:[#allocation13 + $0x28] sm:$0xff]  }
 0x375   :  { %1862 = vmatprep.subr.bf16.mxu1 %v3437_v0  ;;  %1905 = vmatprep.subr.bf16.mxu0 %v3479_v57  ;;  %v3507_v57 = vld [vmem:[#allocation13 + $0x50] sm:$0xff]  }
 0x378   :  { %1863 = vmatpush1.bf16.msra.mxu1 %v3435_v38  ;;  %1906 = vmatpush1.bf16.msra.mxu0 %v3477_v59  ;;  %v3509_v59 = vld [vmem:[#allocation13 + $0x48] sm:$0xff]  }
 0x379   :  { %1864 = vmatprep.subr.bf16.mxu1 %v3440_v39  ;;  %1907 = vmatprep.subr.bf16.mxu0 %v3485_v60  ;;  %v3510_v60 = vld [vmem:[#allocation13 + $0x8] sm:$0xff]  }
 0x37c   :  { %1865 = vmatpush1.bf16.msra.mxu1 %v3438_v40  ;;  %1908 = vmatpush1.bf16.msra.mxu0 %v3483_v63  ;;  %v1598_v63 = vld [vmem:[%s4247_s10] sm:$0x3] }
 0x37d   :  { %1866 = vmatprep.subr.bf16.mxu1 %v3446_v41  ;;  %v3489_v41 = vld [vmem:[#allocation15 + $0x38] sm:$0xff]  }
 0x380   :  { %1867 = vmatpush2.bf16.msra.mxu1 %v3444_v28 }
 0x381   :  { %1868 = vmatprep.subr.bf16.mxu1 %v3452_v29  ;;  %v3490_v29 = vld [vmem:[#allocation15 + $0x30] sm:$0xff]  }
 0x384   :  { %1869 = vmatpush2.bf16.msra.mxu1 %v3450_v42  ;;  %v3491_v42 = vld [vmem:[#allocation15 + $0x28] sm:$0xff]  }
 0x385   :  { %1870 = vmatprep.subr.bf16.mxu1 %v3458_v43  ;;  %v3492_v43 = vld [vmem:[#allocation15 + $0x20] sm:$0xff]  }
 0x388   :  { %1871 = vmatpush2.bf16.msra.mxu1 %v3456_v44  ;;  %v3493_v44 = vld [vmem:[#allocation15 + $0x18] sm:$0xff]  }
 0x389   :  { %1872 = vmatprep.subr.bf16.mxu1 %v3464_v47  ;;  %v3496_v47 = vld [vmem:[#allocation15] sm:$0xff]  }
 0x38c   :  { %1873 = vmatpush2.bf16.msra.mxu1 %v3462_v48  ;;  %v3497_v48 = vld [vmem:[#allocation13 + $0x78] sm:$0xff]  }
 0x38d   :  { %1874 = vmatprep.subr.bf16.mxu1 %v3470_v51  ;;  %3048 = vmatprep.subr.bf16.mxu0 %v3497_v48  ;;  %v3500_v51 = vld [vmem:[#allocation13 + $0x30] sm:$0xff]  }
 0x390   :  { %1875 = vmatpush2.bf16.msra.mxu1 %v3468_v52  ;;  %v3501_v52 = vld [vmem:[#allocation13 + $0x68] sm:$0xff]  }
 0x391   :  { %1876 = vmatprep.subr.bf16.mxu1 %v3476_v56  ;;  %v3506_v56 = vld [vmem:[#allocation13 + $0x18] sm:$0xff]  }
 0x394   :  { %1877 = vmatpush2.bf16.msra.mxu1 %v3474_v55  ;;  %v3504_v55 = vld [vmem:[#allocation13 + $0x20] sm:$0xff]  }
 0x395   :  { %1878 = vmatprep.subr.bf16.mxu1 %v3482_v58  ;;  %v3508_v58 = vld [vmem:[#allocation13 + $0x10] sm:$0xff]  }
 0x398   :  { %1879 = vmatpush2.bf16.msra.mxu1 %v3480_v61  ;;  %v3511_v61 = vld [vmem:[#allocation13 + $0x40] sm:$0xff]  }
 0x399   :  { %1880 = vmatprep.subr.bf16.mxu1 %v3488_v62  ;;  %v3512_v62 = vld [vmem:[#allocation13] sm:$0xff]  }
 0x39c   :  { %1881 = vmatpush2.bf16.msra.mxu1 %v3486_v1 }
 0x39d   :  { %3126 = vmatprep.subr.bf16.mxu1 %v3886_v8 }
 0x41f   :  { %v1470_v2 = vpop.f32.mrf.mxu1  ;;  %v1511_v5 = vpop.f32.mrf.mxu0 }
 0x420   :  { %v1526_v7 = vrot.slane %v1470_v2, %v4071_v22  ;;  %v1534_v10 = vrot.slane %v1511_v5, %v4071_v22  ;;  %v1603_v2 = vrot.slane %v1598_v63, %v4071_v22 }
 0x421   :  { %v1472_v11 = vpop.f32.mrf.mxu1  ;;  %v3124_v12 = vpop.f32.mrf.mxu0 }
 0x422   :  { %v1535_v14 = vadd.f32 %v1526_v7, %v1517_v3  ;;  %v1538_v15 = vadd.f32 %v1526_v7, %v1520_v4  ;;  %v1537_v16 = vadd.f32 %v1534_v10, %v1519_v6  ;;  %v1540_v25 = vadd.f32 %v1534_v10, %v1522_v9 }
 0x423   :  { %v1530_v26 = vrot.slane %v1472_v11, %v4071_v22  ;;  %v1474_v27 = vpop.f32.mrf.mxu1  ;;  %v1514_v31 = vpop.f32.mrf.mxu0  ;;  %v1607_v3 = vrot.slane %v1598_v63, %v4077_v24 }
 0x424   :  { %3559 = vtanh.f32 %v1535_v14 }
 0x425   :  { %3561 = vtanh.f32 %v1538_v15  ;;  %v1536_v32 = vadd.f32 %v1530_v26, %v1518_v17  ;;  %v1539_v18 = vadd.f32 %v1530_v26, %v1521_v23  ;;  %v1475_v33 = vpop.f32.mrf.mxu1  ;;  %v3125_v34 = vpop.f32.mrf.mxu0 }
 0x426   :  { %3563 = vtanh.f32 %v1537_v16 }
 0x427   :  { %3565 = vtanh.f32 %v1540_v25 }
 0x428   :  { %3567 = vtanh.f32 %v1536_v32 }
 0x429   :  { %3569 = vtanh.f32 %v1539_v18 }
 0x431   :  { %v3560_v35 = vpop.eup %3559 }
 0x432   :  { %v3562_v36 = vpop.eup %3561 }
 0x433   :  { %v3564_v37 = vpop.eup %3563  ;;  %v1547_v28 = vpack.c.bf16 %v3562_v36, %v3560_v35 }
 0x434   :  { %v3566_v19 = vpop.eup %3565 }
 0x435   :  { %v3568_v0 = vpop.eup %3567  ;;  %v1549_v38 = vpack.c.bf16 %v3566_v19, %v3564_v37 }
 0x436   :  { %v3570_v39 = vpop.eup %3569 }
 0x437   :  { %1926 = vmatmul.mubr.bf16.vlgmr.msra.gmra.mxu0 %v1549_v38  ;;  %v1548_v40 = vpack.c.bf16 %v3570_v39, %v3568_v0 }
 0x438   :  { %3049 = vmatpush3.bf16.msra.mxu0 %v3498_v49 }
 0x439   :  { %1882 = vmatprep.mubr.bf16.mxu1 %v1548_v40  ;;  %3050 = vmatprep.subr.bf16.mxu0 %v3499_v50 }
 0x43a   :  { %1883 = vmatmul.mubr.bf16.vlgmr.msra.gmra.mxu1 %v1547_v28 }
 0x43b   :  { %3127 = vmatpush3.bf16.msra.mxu1 %v3489_v41  ;;  %3142 = vmatprep.mubr.msk.bf16.mxu1 %vm3887_vm4, %v3886_v8 }
 0x43c   :  { %3128 = vmatprep.subr.bf16.mxu1 %v3886_v8  ;;  %3051 = vmatpush3.bf16.msra.mxu0 %v3500_v51 }
 0x43d   :  { %3052 = vmatprep.subr.bf16.mxu0 %v3501_v52 }
 0x43f   :  { %3129 = vmatpush3.bf16.msra.mxu1 %v3490_v29 }
 0x440   :  { %3130 = vmatprep.subr.bf16.mxu1 %v3886_v8  ;;  %3053 = vmatpush3.bf16.msra.mxu0 %v3502_v53 }
 0x441   :  { %3054 = vmatprep.subr.bf16.mxu0 %v3503_v54 }
 0x443   :  { %3131 = vmatpush3.bf16.msra.mxu1 %v3491_v42 }
 0x444   :  { %3132 = vmatprep.subr.bf16.mxu1 %v3886_v8  ;;  %3055 = vmatpush3.bf16.msra.mxu0 %v3504_v55 }
 0x447   :  { %3133 = vmatpush3.bf16.msra.mxu1 %v3492_v43 }
 0x448   :  { %3134 = vmatprep.subr.bf16.mxu1 %v3886_v8 }
 0x44b   :  { %3135 = vmatpush3.bf16.msra.mxu1 %v3493_v44 }
 0x44c   :  { %3136 = vmatprep.subr.bf16.mxu1 %v3886_v8 }
 0x44f   :  { %3137 = vmatpush3.bf16.msra.mxu1 %v3494_v45 }
 0x450   :  { %3138 = vmatprep.subr.bf16.mxu1 %v3886_v8 }
 0x453   :  { %3139 = vmatpush3.bf16.msra.mxu1 %v3495_v46 }
 0x454   :  { %3140 = vmatprep.subr.bf16.mxu1 %v3886_v8 }
 0x457   :  { %3141 = vmatpush3.bf16.msra.mxu1 %v3496_v47 }
 0x458   :  { %3166 = vmatprep.subr.bf16.mxu1 %v3886_v8 }
 0x45a   :  { %3143 = vmatmul.mubr.bf16.vlgmr.msra.gmra.mxu1 %v4064_v30  ;;  %v3505_v30 = vld [vmem:[#allocation13 + $0x58] sm:$0xff]  }
 0x45b   :  { %3182 = vmatprep.mubr.msk.bf16.mxu1 %vm3887_vm4, %v3886_v8  ;;  %3056 = vmatprep.subr.bf16.mxu0 %v3505_v30 }
 0x45c   :  { %3057 = vmatpush3.bf16.msra.mxu0 %v3506_v56 }
 0x45d   :  { %3058 = vmatprep.subr.bf16.mxu0 %v3507_v57 }
 0x460   :  { %3059 = vmatpush3.bf16.msra.mxu0 %v3508_v58 }
 0x461   :  { %3060 = vmatprep.subr.bf16.mxu0 %v3509_v59 }
 0x464   :  { %3061 = vmatpush3.bf16.msra.mxu0 %v3510_v60 }
 0x465   :  { %3062 = vmatprep.subr.bf16.mxu0 %v3511_v61 }
 0x468   :  { %3063 = vmatpush3.bf16.msra.mxu0 %v3512_v62 }
 0x469   :  { %3146 = vmatprep.subr.bf16.mxu0 %v3886_v8 }
 0x4f7   :  { %v1927_v1 = vpop.f32.mrf.mxu0 }
 0x4f9   :  { %v1929_v5 = vpop.f32.mrf.mxu0 }
 0x4fa   :  { %v1884_v4 = vpop.f32.mrf.mxu1 }
 0x4fb   :  { %v1885_v6 = vadd.f32 %v1884_v4, %v1603_v2  ;;  %v1931_v14 = vpop.f32.mrf.mxu0 }
 0x4fc   :  { %v1886_v7 = vpop.f32.mrf.mxu1 }
 0x4fd   :  { %v4149_v9 = vadd.f32 %v1927_v1, %v1885_v6  ;;  %v1887_v10 = vadd.f32 %v1886_v7, %v1607_v3  ;;  %v1933_v31 = vpop.f32.mrf.mxu0 }
 0x4fe   :  { %v1888_v11 = vpop.f32.mrf.mxu1 }
 0x4ff   :  { %v1940_v12 = vand.u32 2147483647, %v4149_v9  ;;  %v4152_v15 = vadd.f32 %v1929_v5, %v1887_v10  ;;  %v1889_v16 = vadd.f32 %v1888_v11, %v1603_v2 }
 0x500   :  { %v1890_v17 = vpop.f32.mrf.mxu1 }
 0x501   :  { %v1944_v23 = vsub.f32 0.0, %v1940_v12  ;;  %v1941_v22 = vand.u32 2147483647, %v4152_v15  ;;  %v4155_v25 = vadd.f32 %v1931_v14, %v1889_v16  ;;  %v1891_v24 = vadd.f32 %v1890_v17, %v1607_v3 }
 0x502   :  { %v1937_v16 = vmax.f32 %v4152_v15, 0.0  ;;  %v3515_v15 = vld [vmem:[#allocation16 + $0x28] sm:$0xff]  }
 0x503   :  { %v1948_v26 = vmul.f32 1.442695, %v1944_v23  ;;  %v1945_v27 = vsub.f32 0.0, %v1941_v22  ;;  %v1942_v32 = vand.u32 2147483647, %v4155_v25  ;;  %v4158_v18 = vadd.f32 %v1933_v31, %v1891_v24 }
 0x504   :  { %v1938_v6 = vmax.f32 %v4155_v25, 0.0  ;;  %v1936_v23 = vmax.f32 %v4149_v9, 0.0  ;;  %v3516_v9 = vld [vmem:[#allocation16 + $0x20] sm:$0xff]  }
 0x505   :  { %3571 = vpow2.f32 %v1948_v26  ;;  %v1950_v33 = vmul.f32 1.442695, %v1945_v27  ;;  %v1946_v34 = vsub.f32 0.0, %v1942_v32  ;;  %v1943_v35 = vand.u32 2147483647, %v4158_v18  ;;  %v3513_v32 = vld [vmem:[#allocation16 + $0x38] sm:$0xff]  }
 0x506   :  { %v1939_v17 = vmax.f32 %v4158_v18, 0.0  ;;  %v3517_v18 = vld [vmem:[#allocation16 + $0x18] sm:$0xff]  }
 0x507   :  { %3573 = vpow2.f32 %v1950_v33  ;;  %v1952_v36 = vmul.f32 1.442695, %v1946_v34  ;;  %v1947_v37 = vsub.f32 0.0, %v1943_v35  ;;  %v3514_v34 = vld [vmem:[#allocation16 + $0x30] sm:$0xff]  }
 0x508   :  { %v3518_v35 = vld [vmem:[#allocation16 + $0x10] sm:$0xff]  }
 0x509   :  { %3575 = vpow2.f32 %v1952_v36  ;;  %v1954_v19 = vmul.f32 1.442695, %v1947_v37  ;;  %v2296_v36 = vld [vmem:[%s4251_s14] sm:$0x1] }
 0x50a   :  { %v3519_v37 = vld [vmem:[#allocation16 + $0x8] sm:$0xff]  }
 0x50b   :  { %3577 = vpow2.f32 %v1954_v19 }
 0x512   :  { %v3572_v0 = vpop.eup %3571 }
 0x513   :  { %v1956_v38 = vadd.f32 1.0, %v3572_v0  ;;  %v1959_v49 = vmul.f32 -0.5, %v3572_v0  ;;  %v1962_v58 = vand.u32 2147483647, %v3572_v0 }
 0x514   :  { %v3574_v39 = vpop.eup %3573 }
 0x515   :  { %v1965_v40 = vadd.f32 1.0, %v3574_v39  ;;  %3579 = vlog2.f32 %v1956_v38  ;;  %v1968_v47 = vmul.f32 -0.5, %v3574_v39  ;;  %v1960_v30 = vadd.f32 1.0, %v1959_v49 }
 0x516   :  { %v3576_v41 = vpop.eup %3575  ;;  %v1971_v56 = vand.u32 2147483647, %v3574_v39  ;;  %vm1963_vm7 = vcmp.lt.f32.partialorder %v1962_v58, 0.0004427343 }
 0x517   :  { %v1974_v28 = vadd.f32 1.0, %v3576_v41  ;;  %3581 = vlog2.f32 %v1965_v40  ;;  %v1977_v46 = vmul.f32 -0.5, %v3576_v41  ;;  %v1980_v53 = vand.u32 2147483647, %v3576_v41  ;;  %v3521_v40 = vld [vmem:[#allocation18 + $0x38] sm:$0xff]  }
 0x518   :  { %v3578_v29 = vpop.eup %3577  ;;  %v1969_v54 = vadd.f32 1.0, %v1968_v47  ;;  %v1961_v5 = vmul.f32 %v3572_v0, %v1960_v30  ;;  %vm1972_vm6 = vcmp.lt.f32.partialorder %v1971_v56, 0.0004427343  ;;  %v3520_v0 = vld [vmem:[#allocation16] sm:$0xff]   ;;  %3167 = vmatpush3.bf16.msra.mxu1 %v3521_v40  ;;  %v2944_v47 = vld [vmem:[%s4249_s12] ss:$0 sm:$0xff] }
 0x519   :  { %3583 = vlog2.f32 %v1974_v28  ;;  %v1983_v43 = vadd.f32 1.0, %v3578_v29  ;;  %v1986_v50 = vmul.f32 -0.5, %v3578_v29  ;;  %v1978_v51 = vadd.f32 1.0, %v1977_v46  ;;  %3168 = vmatprep.subr.bf16.mxu1 %v3886_v8  ;;  %v3523_v28 = vld [vmem:[#allocation18 + $0x28] sm:$0xff]  }
 0x51a   :  { %v4161_v42 = vpop.f32.mrf.mxu1  ;;  %v1989_v1 = vand.u32 2147483647, %v3578_v29  ;;  %vm4163_vm5 = vcmp.lt.f32.partialorder %v1980_v53, 0.0004427343  ;;  %v1970_v3 = vmul.f32 %v3574_v39, %v1969_v54 }
 0x51b   :  { %3585 = vlog2.f32 %v1983_v43  ;;  %v1987_v60 = vadd.f32 1.0, %v1986_v50  ;;  %v1979_v63 = vmul.f32 %v3576_v41, %v1978_v51  ;;  %v2380_v19 = vadd.f32 %v4161_v42, %v2296_v36  ;;  %v3522_v41 = vld [vmem:[#allocation18 + $0x30] sm:$0xff]   ;;  %v3525_v42 = vld [vmem:[#allocation18 + $0x18] sm:$0xff]  }
 0x51c   :  { %v3144_v44 = vpop.f32.mrf.mxu1  ;;  %vm1990_vm8 = vcmp.lt.f32.partialorder %v1989_v1, 0.0004427343  ;;  %3169 = vmatpush3.bf16.msra.mxu1 %v3522_v41  ;;  %v3526_v43 = vld [vmem:[#allocation18 + $0x10] sm:$0xff]  }
 0x51d   :  { %v1988_v12 = vmul.f32 %v3578_v29, %v1987_v60  ;;  %v2385_v38 = vadd.f32 %v4121_v13, %v2380_v19  ;;  %3170 = vmatprep.subr.bf16.mxu1 %v3886_v8  ;;  %v3524_v29 = vld [vmem:[#allocation18 + $0x20] sm:$0xff]   ;;  %v3527_v44 = vld [vmem:[#allocation18 + $0x8] sm:$0xff]  }
 0x51e   :  { %v2382_v45 = vpop.f32.mrf.mxu1 }
 0x51f   :  { %v2386_v39 = vpack.c.bf16 %v2385_v38, %v2385_v38  ;;  %v3528_v45 = vld [vmem:[#allocation18] sm:$0xff]  }
 0x520   :  { %v3145_v48 = vpop.f32.mrf.mxu1  ;;  %3171 = vmatpush3.bf16.msra.mxu1 %v3523_v28 }
 0x521   :  { %3172 = vmatprep.subr.bf16.mxu1 %v3886_v8 }
 0x522   :  { %v3580_v52 = vpop.eup %3579 }
 0x523   :  { %v1958_v61 = vmul.f32 0.6931472, %v3580_v52 }
 0x524   :  { %v3582_v55 = vpop.eup %3581  ;;  %3173 = vmatpush3.bf16.msra.mxu1 %v3524_v29 }
 0x525   :  { %v1967_v59 = vmul.f32 0.6931472, %v3582_v55  ;;  %v1964_v14 = vsel %vm1963_vm7, %v1961_v5, %v1958_v61  ;;  %3174 = vmatprep.subr.bf16.mxu1 %v3886_v8 }
 0x526   :  { %v3584_v57 = vpop.eup %3583  ;;  %v1992_v27 = vadd.f32 %v1964_v14, %v1936_v23 }
 0x527   :  { %v1976_v62 = vmul.f32 0.6931472, %v3584_v57  ;;  %v1973_v10 = vsel %vm1972_vm6, %v1970_v3, %v1967_v59 }
 0x528   :  { %v3586_v4 = vpop.eup %3585  ;;  %v1993_v26 = vadd.f32 %v1973_v10, %v1937_v16  ;;  %3175 = vmatpush3.bf16.msra.mxu1 %v3525_v42 }
 0x529   :  { %v1982_v7 = vsel %vm4163_vm5, %v1979_v63, %v1976_v62  ;;  %v1985_v11 = vmul.f32 0.6931472, %v3586_v4  ;;  %3176 = vmatprep.subr.bf16.mxu1 %v3886_v8  ;;  %v2403_v63 = vld [vmem:[%s4253_s16] sm:$0x1] }
 0x52a   :  { %v1994_v22 = vadd.f32 %v1982_v7, %v1938_v6 }
 0x52b   :  { %v1991_v24 = vsel %vm1990_vm8, %v1988_v12, %v1985_v11 }
 0x52c   :  { %v1995_v25 = vadd.f32 %v1991_v24, %v1939_v17  ;;  %v1996_v33 = vpack.c.bf16 %v1994_v22, %v1992_v27  ;;  %3177 = vmatpush3.bf16.msra.mxu1 %v3526_v43 }
 0x52d   :  { %3178 = vmatprep.subr.bf16.mxu1 %v3886_v8 }
 0x52e   :  { %v1997_v31 = vpack.c.bf16 %v1995_v25, %v1993_v26  ;;  %v4204_v25 = vadd.s32 8, %v4068_v21 }
 0x530   :  { %2165 = vmatprep.mubr.bf16.mxu0 %v1997_v31  ;;  %3179 = vmatpush3.bf16.msra.mxu1 %v3527_v44  ;;  %vm2208_vm11 = vcmp.lt.s32.totalorder %v4204_v25, 10 }
 0x531   :  { %2166 = vmatmul.mubr.bf16.vlgmr.msra.gmra.mxu0 %v1996_v33  ;;  %3180 = vmatprep.subr.bf16.mxu1 %v3886_v8 }
 0x532   :  { %3147 = vmatpush3.bf16.msra.mxu0 %v3513_v32  ;;  %3162 = vmatprep.mubr.msk.bf16.mxu0 %vm3887_vm4, %v3886_v8 }
 0x533   :  { %3148 = vmatprep.subr.bf16.mxu0 %v3886_v8 }
 0x534   :  { %3181 = vmatpush3.bf16.msra.mxu1 %v3528_v45 }
 0x536   :  { %3149 = vmatpush3.bf16.msra.mxu0 %v3514_v34 }
 0x537   :  { %3150 = vmatprep.subr.bf16.mxu0 %v3886_v8 }
 0x53a   :  { %3151 = vmatpush3.bf16.msra.mxu0 %v3515_v15 }
 0x53b   :  { %3152 = vmatprep.subr.bf16.mxu0 %v3886_v8 }
 0x53e   :  { %3153 = vmatpush3.bf16.msra.mxu0 %v3516_v9 }
 0x53f   :  { %3154 = vmatprep.subr.bf16.mxu0 %v3886_v8 }
 0x542   :  { %3155 = vmatpush3.bf16.msra.mxu0 %v3517_v18 }
 0x543   :  { %3156 = vmatprep.subr.bf16.mxu0 %v3886_v8 }
 0x546   :  { %3157 = vmatpush3.bf16.msra.mxu0 %v3518_v35 }
 0x547   :  { %3158 = vmatprep.subr.bf16.mxu0 %v3886_v8 }
 0x54a   :  { %3159 = vmatpush3.bf16.msra.mxu0 %v3519_v37 }
 0x54b   :  { %3160 = vmatprep.subr.bf16.mxu0 %v3886_v8 }
 0x54e   :  { %3161 = vmatpush3.bf16.msra.mxu0 %v3520_v0 }
 0x54f   :  { %3186 = vmatprep.subr.bf16.mxu0 %v3886_v8 }
 0x551   :  { %3163 = vmatmul.mubr.bf16.vlgmr.msra.gmra.mxu0 %v2386_v39 }
 0x552   :  { %3202 = vmatprep.mubr.msk.bf16.mxu0 %vm3887_vm4, %v3886_v8 }
 0x5f1   :  { %v3064_v46 = vpop.f32.mrf.mxu0 }
 0x5f3   :  { %v3065_v48 = vpop.f32.mrf.mxu0 }
 0x5f4   :  { %v3066_v49 = vadd.f32 %v3065_v48, %v3064_v46 }
 0x5f5   :  { %v3067_v50 = vpop.f32.mrf.mxu0 }
 0x5f6   :  { %v2168_v51 = vadd.f32 %v3066_v49, %v2944_v47 }
 0x5f7   :  { %v3068_v52 = vpop.f32.mrf.mxu0 }
 0x5f8   :  { %v2176_v53 = vand.u32 2147483647, %v2168_v51  ;;  %v3069_v54 = vadd.f32 %v3068_v52, %v3067_v50  ;;  %v2174_v32 = vmax.f32 %v2168_v51, 0.0 }
 0x5fa   :  { %v2178_v55 = vsub.f32 0.0, %v2176_v53  ;;  %v2171_v30 = vadd.f32 %v3069_v54, %v2944_v47 }
 0x5fc   :  { %v2180_v56 = vmul.f32 1.442695, %v2178_v55  ;;  %v2177_v57 = vand.u32 2147483647, %v2171_v30  ;;  %v2175_v15 = vmax.f32 %v2171_v30, 0.0 }
 0x5fe   :  { %3587 = vpow2.f32 %v2180_v56  ;;  %v2179_v58 = vsub.f32 0.0, %v2177_v57  ;;  %v2237_v56 = vcvt.s32.f32 %v4204_v25  ;;  %v2236_v57 = vcvt.s32.f32 %v4068_v21 }
 0x600   :  { %v2182_v59 = vmul.f32 1.442695, %v2179_v58 }
 0x602   :  { %3589 = vpow2.f32 %v2182_v59 }
 0x60b   :  { %v3588_v60 = vpop.eup %3587 }
 0x60c   :  { %v2184_v61 = vadd.f32 1.0, %v3588_v60  ;;  %v2187_v7 = vmul.f32 -0.5, %v3588_v60  ;;  %v2190_v16 = vand.u32 2147483647, %v3588_v60 }
 0x60e   :  { %3591 = vlog2.f32 %v2184_v61  ;;  %v2188_v14 = vadd.f32 1.0, %v2187_v7  ;;  %vm2191_vm9 = vcmp.lt.f32.partialorder %v2190_v16, 0.0004427343  ;;  %v3531_v16 = vld [vmem:[#allocation19 + $0x28] sm:$0xff]  }
 0x60f   :  { %v3590_v62 = vpop.eup %3589 }
 0x610   :  { %v2193_v1 = vadd.f32 1.0, %v3590_v62  ;;  %v2196_v12 = vmul.f32 -0.5, %v3590_v62  ;;  %v2199_v24 = vand.u32 2147483647, %v3590_v62  ;;  %v2189_v26 = vmul.f32 %v3588_v60, %v2188_v14  ;;  %v3530_v14 = vld [vmem:[#allocation19 + $0x30] sm:$0xff]  }
 0x611   :  { %v2486_v2 = vpop.f32.mrf.mxu0 }
 0x612   :  { %3593 = vlog2.f32 %v2193_v1  ;;  %v2487_v3 = vadd.f32 %v2486_v2, %v2403_v63  ;;  %v2197_v23 = vadd.f32 1.0, %v2196_v12  ;;  %vm2200_vm10 = vcmp.lt.f32.partialorder %v2199_v24, 0.0004427343  ;;  %v3535_v24 = vld [vmem:[#allocation19 + $0x8] sm:$0xff]  }
 0x613   :  { %v3164_v4 = vpop.f32.mrf.mxu0 }
 0x614   :  { %v2492_v5 = vsub.f32 0.0, %v2487_v3  ;;  %v2198_v34 = vmul.f32 %v3590_v62, %v2197_v23  ;;  %v3533_v23 = vld [vmem:[#allocation19 + $0x18] sm:$0xff]  }
 0x615   :  { %v2489_v6 = vpop.f32.mrf.mxu0 }
 0x616   :  { %v2493_v10 = vmul.f32 1.442695, %v2492_v5 }
 0x617   :  { %v3165_v11 = vpop.f32.mrf.mxu0 }
 0x618   :  { %3595 = vpow2.f32 %v2493_v10  ;;  %v3529_v10 = vld [vmem:[#allocation19 + $0x38] sm:$0xff]  }
 0x619   :  { %3187 = vmatpush3.bf16.msra.mxu0 %v3529_v10 }
 0x61a   :  { %3188 = vmatprep.subr.bf16.mxu0 %v3886_v8 }
 0x61b   :  { %v3592_v17 = vpop.eup %3591 }
 0x61c   :  { %v2186_v22 = vmul.f32 0.6931472, %v3592_v17  ;;  %v3532_v17 = vld [vmem:[#allocation19 + $0x20] sm:$0xff]  }
 0x61d   :  { %3189 = vmatpush3.bf16.msra.mxu0 %v3530_v14 }
 0x61e   :  { %v2192_v31 = vsel %vm2191_vm9, %v2189_v26, %v2186_v22  ;;  %3190 = vmatprep.subr.bf16.mxu0 %v3886_v8  ;;  %v3534_v22 = vld [vmem:[#allocation19 + $0x10] sm:$0xff]   ;;  %v3536_v26 = vld [vmem:[#allocation19] sm:$0xff]  }
 0x61f   :  { %v3594_v27 = vpop.eup %3593  ;;  %v2202_v18 = vadd.f32 %v2192_v31, %v2174_v32 }
 0x620   :  { %v2195_v33 = vmul.f32 0.6931472, %v3594_v27  ;;  %v2515_v27 = vld [vmem:[%s4255_s18] sm:$0x1] }
 0x621   :  { %v2212_v38 = vsel %vm2211_vm12, %v2202_v18, 0.0  ;;  %3191 = vmatpush3.bf16.msra.mxu0 %v3531_v16 }
 0x622   :  { %v2201_v9 = vsel %vm2200_vm10, %v2198_v34, %v2195_v33  ;;  %3192 = vmatprep.subr.bf16.mxu0 %v3886_v8 }
 0x623   :  { %v2203_v35 = vadd.f32 %v2201_v9, %v2175_v15 }
 0x625   :  { %v3596_v36 = vpop.eup %3595  ;;  %v2210_v37 = vsel %vm2208_vm11, %v2203_v35, 0.0  ;;  %3193 = vmatpush3.bf16.msra.mxu0 %v3532_v17  ;;  %v2622_v35 = vld [vmem:[%s4257_s20] sm:$0x1] }
 0x626   :  { %v2213_v19 = vsel %vm2211_vm12, %v2210_v37, 0.0  ;;  %v2495_v0 = vadd.f32 1.0, %v3596_v36  ;;  %3194 = vmatprep.subr.bf16.mxu0 %v3886_v8 }
 0x627   :  { %v2214_v39 = vadd.f32 %v2213_v19, %v2212_v38 }
 0x628   :  { %3597 = vrcp.f32 %v2495_v0 }
 0x629   :  { %v2215_v40 = vrot.slane %v2214_v39, 4  ;;  %3195 = vmatpush3.bf16.msra.mxu0 %v3533_v23 }
 0x62a   :  { %3196 = vmatprep.subr.bf16.mxu0 %v3886_v8 }
 0x62b   :  { %v2216_v41 = vadd.f32 %v2215_v40, %v2214_v39 }
 0x62d   :  { %v2217_v28 = vrot.slane %v2216_v41, 2  ;;  %3197 = vmatpush3.bf16.msra.mxu0 %v3534_v22 }
 0x62e   :  { %3198 = vmatprep.subr.bf16.mxu0 %v3886_v8 }
 0x62f   :  { %v2218_v29 = vadd.f32 %v2217_v28, %v2216_v41 }
 0x631   :  { %v2219_v42 = vrot.slane %v2218_v29, 1  ;;  %3199 = vmatpush3.bf16.msra.mxu0 %v3535_v24 }
 0x632   :  { %3200 = vmatprep.subr.bf16.mxu0 %v3886_v8 }
 0x633   :  { %v2220_v43 = vadd.f32 %v2219_v42, %v2218_v29 }
 0x635   :  { %v3598_v44 = vpop.eup %3597  ;;  %3599 = vrcp.f32 %v2220_v43  ;;  %3201 = vmatpush3.bf16.msra.mxu0 %v3536_v26 }
 0x636   :  { %v2498_v45 = vpack.c.bf16 %v3598_v44, %v3598_v44 }
 0x638   :  { %3183 = vmatmul.mubr.bf16.vlgmr.msra.gmra.mxu1 %v2498_v45 }
 0x642   :  { %v3600_v46 = vpop.eup %3599 }
 0x643   :  { %v2222_v47 = vmul.f32 %v3600_v46, %v2202_v18  ;;  %v2223_v48 = vmul.f32 %v3600_v46, %v2210_v37 }
 0x645   :  { %2263 = vperm.xlu0 %3231, %v2222_v47   ;;  %v2224_v49 = vsel %vm2211_vm12, %v2222_v47, -inf  ;;  %v2225_v50 = vsel %vm2211_vm12, %v2223_v48, -inf }
 0x646   :  { %v2226_v51 = vmax.f32 %v2224_v49, %v2225_v50 }
 0x648   :  { %v2227_v52 = vrot.slane %v2226_v51, 4 }
 0x649   :  { %2268 = vperm.xlu0 %3231, %v2223_v48  }
 0x64a   :  { %v2228_v53 = vmax.f32 %v2226_v51, %v2227_v52  ;;  %v2254_v51 = vadd.s32 80, %v4204_v25 }
 0x64c   :  { %v2229_v54 = vrot.slane %v2228_v53, 2 }
 0x64e   :  { %v2230_v55 = vmax.f32 %v2228_v53, %v2229_v54  ;;  %v2252_v53 = vand.u32 127, %v330_v20  ;;  %v2253_v54 = vadd.s32 80, %v4068_v21 }
 0x650   :  { %v2231_v30 = vrot.slane %v2230_v55, 1  ;;  %vm2256_vm0 = vcmp.eq.s32.totalorder %v2252_v53, %v2254_v51  ;;  %vm2255_vm1 = vcmp.eq.s32.totalorder %v2252_v53, %v2253_v54  ;;  %vm2727_vm2 = vcmp.eq.s32.totalorder %v2252_v53, 64 }
 0x651   :  { %vm2734_vm3 = vcmp.eq.s32.totalorder %v2252_v53, 65  ;;  %vm2741_vm4 = vcmp.eq.s32.totalorder %v2252_v53, 66 }
 0x652   :  { %v2232_v58 = vmax.f32 %v2230_v55, %v2231_v30  ;;  %v2962_v55 = vsel %vm2256_vm0, 1.0, %v3886_v8 }
 0x654   :  { %vm2239_vm13 = vcmp.eq.f32.partialorder %v2223_v48, %v2232_v58  ;;  %vm2238_vm14 = vcmp.eq.f32.partialorder %v2222_v47, %v2232_v58  ;;  %3601 = vlog2.f32 %v2232_v58 }
 0x655   :  { %v2241_v59 = vsel %vm2239_vm13, %v2237_v56, 16.0  ;;  %v2240_v60 = vsel %vm2238_vm14, %v2236_v57, 16.0  ;;  %v2961_v56 = vsel %vm2255_vm1, 1.0, %v3886_v8 }
 0x656   :  { %v2243_v61 = vsel %vm2211_vm12, %v2241_v59, inf  ;;  %v2242_v62 = vsel %vm2211_vm12, %v2240_v60, inf }
 0x657   :  { %v2244_v63 = vmin.f32 %v2242_v62, %v2243_v61 }
 0x659   :  { %v2245_v1 = vrot.slane %v2244_v63, 4 }
 0x65b   :  { %v2246_v2 = vmin.f32 %v2244_v63, %v2245_v1 }
 0x65d   :  { %v2247_v3 = vrot.slane %v2246_v2, 2 }
 0x65f   :  { %v2248_v4 = vmin.f32 %v2246_v2, %v2247_v3 }
 0x661   :  { %v3602_v5 = vpop.eup %3601  ;;  %v2249_v6 = vrot.slane %v2248_v4, 1 }
 0x662   :  { %v2234_v7 = vmul.f32 0.6931472, %v3602_v5 }
 0x663   :  { %v2250_v11 = vmin.f32 %v2248_v4, %v2249_v6 }
 0x664   :  { %v2235_v12 = vsub.f32 0.0, %v2234_v7 }
 0x665   :  { %2744 = vperm.xlu0 %3231, %v2250_v11  }
 0x666   :  { %2730 = vperm.xlu1 %3232, %v2235_v12  }
 0x6c0   :  { %v2264_v52 = vpop.permute.xlu0 %2263 }
 0x6c1   :  { %v2271_v58 = vmul.f32 %v2961_v56, %v2264_v52 }
 0x6c4   :  { %v2269_v30 = vpop.permute.xlu0 %2268 }
 0x6c5   :  { %v2272_v57 = vmul.f32 %v2962_v55, %v2269_v30 }
 0x6c7   :  { %v2273_v59 = vadd.f32 %v2272_v57, %v2271_v58 }
 0x6c9   :  { %v2274_v60 = vrot.slane %v2273_v59, 4 }
 0x6cb   :  { %v2275_v61 = vadd.f32 %v2274_v60, %v2273_v59 }
 0x6cd   :  { %v2276_v62 = vrot.slane %v2275_v61, 2 }
 0x6cf   :  { %v2277_v63 = vadd.f32 %v2276_v62, %v2275_v61 }
 0x6d1   :  { %v2278_v25 = vrot.slane %v2277_v63, 1 }
 0x6d3   :  { %v2279_v1 = vadd.f32 %v2278_v25, %v2277_v63 }
 0x6d5   :  { %v2726_v20 = vadd.f32 %v4121_v13, %v2279_v1 }
 0x6e0   :  { %v2745_v4 = vpop.permute.xlu0 %2744 }
 0x6e1   :  { %v2731_v2 = vpop.permute.xlu1 %2730 }
 0x6e2   :  { %v2733_v21 = vsel %vm2727_vm2, %v2731_v2, %v2726_v20 }
 0x6f8   :  { %v2598_v31 = vpop.f32.mrf.mxu1 }
 0x6f9   :  { %v2599_v32 = vadd.f32 %v2598_v31, %v2515_v27 }
 0x6fa   :  { %v3184_v33 = vpop.f32.mrf.mxu1 }
 0x6fb   :  { %3603 = vtanh.f32 %v2599_v32 }
 0x6fc   :  { %v2601_v34 = vpop.f32.mrf.mxu1 }
 0x6fe   :  { %v3185_v15 = vpop.f32.mrf.mxu1 }
 0x708   :  { %v3604_v9 = vpop.eup %3603 }
 0x709   :  { %v2605_v18 = vpack.c.bf16 %v3604_v9, %v3604_v9 }
 0x70b   :  { %3203 = vmatmul.mubr.bf16.vlgmr.msra.gmra.mxu0 %v2605_v18 }
 0x7cb   :  { %v2705_v36 = vpop.f32.mrf.mxu0 }
 0x7cc   :  { %v2706_v37 = vadd.f32 %v2705_v36, %v2622_v35 }
 0x7cd   :  { %v3204_v19 = vpop.f32.mrf.mxu0 }
 0x7ce   :  { %v2712_v0 = vand.u32 2147483647, %v2706_v37  ;;  %v2711_v48 = vmax.f32 %v2706_v37, 0.0 }
 0x7cf   :  { %v2708_v38 = vpop.f32.mrf.mxu0 }
 0x7d0   :  { %v2713_v39 = vsub.f32 0.0, %v2712_v0 }
 0x7d1   :  { %v3205_v40 = vpop.f32.mrf.mxu0 }
 0x7d2   :  { %v2714_v41 = vmul.f32 1.442695, %v2713_v39 }
 0x7d4   :  { %3605 = vpow2.f32 %v2714_v41 }
 0x7e1   :  { %v3606_v28 = vpop.eup %3605 }
 0x7e2   :  { %v2716_v29 = vadd.f32 1.0, %v3606_v28  ;;  %v2719_v42 = vmul.f32 -0.5, %v3606_v28  ;;  %v2722_v44 = vand.u32 2147483647, %v3606_v28 }
 0x7e4   :  { %3607 = vlog2.f32 %v2716_v29  ;;  %v2720_v43 = vadd.f32 1.0, %v2719_v42  ;;  %vm2723_vm15 = vcmp.lt.f32.partialorder %v2722_v44, 0.0004427343 }
 0x7e6   :  { %v2721_v47 = vmul.f32 %v3606_v28, %v2720_v43 }
 0x7f1   :  { %v3608_v45 = vpop.eup %3607 }
 0x7f2   :  { %v2718_v46 = vmul.f32 0.6931472, %v3608_v45 }
 0x7f4   :  { %v2724_v49 = vsel %vm2723_vm15, %v2721_v47, %v2718_v46 }
 0x7f5   :  { %v2725_v50 = vadd.f32 %v2724_v49, %v2711_v48 }
 0x7f7   :  { %2737 = vperm.xlu1 %3232, %v2725_v50  }
 0x872   :  { %v2738_v3 = vpop.permute.xlu1 %2737 }
 0x873   :  { %v2740_v5 = vsel %vm2734_vm3, %v2738_v3, %v2733_v21 }
 0x874   :  { %v2747_v8 = vsel %vm2741_vm4, %v2745_v4, %v2740_v5 }
 0x875   :  { %2748 = vst [vmem:[%s4258_s21] sm:$0x1] %v2747_v8 }
 0x876   :  { %2753 = vsyncpa [#allocation3], 1 }
 0x877   :  { %2754 = vsyncpa [#allocation5], 1 }
 0x878   :  { %2755 = vsyncpa [#allocation8], 1 }
 0x879   :  { %2756 = vsyncpa [#allocation11], 1 }
 0x87a   :  { %2757 = vsyncpa [#allocation14], 1 }
 0x87b   :  { %2758 = vsyncpa [#allocation17], 1 }
 0x87c   :  { %2759 = vsyncpa [#allocation20], 1 }

</bundles_post_ra>
